<compile_context>
chip_gen: v7x
topology: tpu7x:2x2x1
jax: 0.10.0
libtpu: 0.0.40
codegen_flags: <defaults>
</compile_context>

<pallas_src>
import jax
import jax.numpy as jnp
from jax import lax
from jax.experimental import pallas as pl
from jax.experimental.pallas import tpu as pltpu


def _make_kernel(*, Bp, H, C, t_chunk, n_chunks, T, needs_mask, use_roll, unroll):
    FH = 4 * H

    def kernel(xproj_ref, whh0_ref, w1_ref, b1_ref, wfc_ref, bfc_ref, out_ref,
               h0_scr, c0_scr, h1_scr, c1_scr):
        t_blk = pl.program_id(0)

        @pl.when(t_blk == 0)
        def _init():
            h0_scr[...] = jnp.zeros_like(h0_scr)
            c0_scr[...] = jnp.zeros_like(c0_scr)
            h1_scr[...] = jnp.zeros_like(h1_scr)
            c1_scr[...] = jnp.zeros_like(c1_scr)

        # Hoisted (per chunk, not per timestep): weight loads, bias broadcast,
        # gate-block masks and the sigmoid-via-tanh scale/offset vectors.
        whh0 = whh0_ref[...]
        w1 = w1_ref[...]
        b1 = jnp.broadcast_to(b1_ref[...], (Bp, FH))

        lane = lax.broadcasted_iota(jnp.int32, (Bp, FH), 1)
        g_blk = (lane >= 2 * H) & (lane < 3 * H)
        # sigmoid(x) = 0.5*tanh(0.5*x) + 0.5 -> ONE EUP tanh covers all 4 gates.
        scale = jnp.where(g_blk, 1.0, 0.5).astype(jnp.float32)
        offset = jnp.where(g_blk, 0.0, 0.5).astype(jnp.float32)

        def gate_act(gates):
            # Gate lanes [i|f|g|o]: tanh on the "g" block, sigmoid elsewhere.
            return scale * jnp.tanh(gates * scale) + offset

        if use_roll:
            o_blk = lane >= 3 * H

            def cell(gates, c_full, h_at_f):
                act = gate_act(gates)
                # i*g lands on the "f" block for either roll-direction
                # convention (paired H / 3H shifts).
                ig = pltpu.roll(act, H, 1) * pltpu.roll(act, 3 * H, 1)
                # c garbage lanes grow ~linearly with T (|i*g|,|act|<=1):
                # harmless in f32; zero weight rows discard them.
                c_new = ig + act * c_full          # i*g + f*c (valid @ "f")
                tc = jnp.tanh(c_new)
                if h_at_f:
                    # o*tanh(c) valid at the "f" block (2H shift is symmetric).
                    h_new = pltpu.roll(act, 2 * H, 1) * tc
                else:
                    # o*tanh(c) valid at the "o" block.
                    h_new = act * pltpu.roll(tc, 2 * H, 1)
                return h_new, c_new

            def layer1_input(h0_new, h1_prev):
                # h0 valid at "o", h1 valid at "f"; every other row of the
                # fused weight is zero, so garbage lanes are discarded.
                return jnp.where(o_blk, h0_new, h1_prev)
        else:
            def cell(gates, c, h_at_f):
                del h_at_f
                act = gate_act(gates)
                i = act[:, 0 * H:1 * H]
                f = act[:, 1 * H:2 * H]
                g = act[:, 2 * H:3 * H]
                o = act[:, 3 * H:4 * H]
                c_new = f * c + i * g
                h_new = o * jnp.tanh(c_new)
                return h_new, c_new

            def layer1_input(h0_new, h1_prev):
                # (Bp, 2H) against vertically stacked [Wih1; Whh1].
                return jnp.concatenate([h0_new, h1_prev], axis=-1)

        def step(t, carry):
            h0m, c0, h1m, c1 = carry
            pre0 = xproj_ref[t]                       # x_t @ Wih0 + b0 (hoisted)
            g0 = pre0 + jnp.dot(h0m, whh0, preferred_element_type=jnp.float32)
            h0n, c0n = cell(g0, c0, h_at_f=False)
            # Single fused MXU op for both layer-1 matmuls.
            g1 = jnp.dot(layer1_input(h0n, h1m), w1,
                         preferred_element_type=jnp.float32) + b1
            h1n, c1n = cell(g1, c1, h_at_f=True)
            if needs_mask:
                valid = (t_blk * t_chunk + t) < T     # hold state on padded steps
                h0n = jnp.where(valid, h0n, h0m)
                c0n = jnp.where(valid, c0n, c0)
                h1n = jnp.where(valid, h1n, h1m)
                c1n = jnp.where(valid, c1n, c1)
            return h0n, c0n, h1n, c1n

        carry = (h0_scr[...], c0_scr[...], h1_scr[...], c1_scr[...])
        h0m, c0, h1m, c1 = lax.fori_loop(0, t_chunk, step, carry, unroll=unroll)
        h0_scr[...] = h0m
        c0_scr[...] = c0
        h1_scr[...] = h1m
        c1_scr[...] = c1

        @pl.when(t_blk == n_chunks - 1)
        def _final():
            out_ref[...] = (jnp.dot(h1m, wfc_ref[...],
                                    preferred_element_type=jnp.float32)
                            + bfc_ref[...])

    return kernel


def _const_spec(shape):
    """BlockSpec for an operand whose block never changes (single-buffered)."""
    imap = lambda t: (0,) * len(shape)
    try:
        return pl.BlockSpec(shape, imap, pipeline_mode=pl.Buffered(1))
    except Exception:  # older jax without pipeline_mode / Buffered
        return pl.BlockSpec(shape, imap)


def chromosome_selector(large_x, params, *, t_chunk=None):
    """large_x: (B, T, D) batch_first float, like the PyTorch module. Returns (B, C)."""
    B, T, D = large_x.shape
    H = params["whh0_t"].shape[0]
    C = params["wfc_t"].shape[1]
    FH = 4 * H
    # Lane-block/roll path only when 4H maps cleanly to 128 lanes and H < 128;
    # otherwise use the compact (sliced-gate) path.
    use_roll = (H % 32 == 0) and (H < 128)

    # Pad batch to a sublane multiple (f32 vreg is (8, 128)).
    Bp = max(8, ((B + 7) // 8) * 8)
    x = large_x.astype(jnp.float32)
    if Bp != B:
        x = jnp.pad(x, ((0, Bp - B), (0, 0), (0, 0)))

    # Hoisted layer-0 input projection for ALL timesteps (one big MXU einsum);
    # also folds away the batch-first -> time-major transpose.
    x_proj = jnp.einsum("btd,df->tbf", x, params["wih0_t"].astype(jnp.float32),
                        preferred_element_type=jnp.float32,
                        precision=lax.Precision.HIGHEST) + params["b0"]

    # --- weight packing -----------------------------------------------------
    if use_roll:
        def embed(w_t, row0):
            z = jnp.zeros((FH, w_t.shape[1]), jnp.float32)
            return z.at[row0:row0 + w_t.shape[0], :].set(w_t)
        whh0_in = embed(params["whh0_t"], 3 * H)               # h0 lives @ "o"
        w1_in = (embed(params["wih1_t"], 3 * H)                # consumes h0 @ "o"
                 + embed(params["whh1_t"], 1 * H))             # consumes h1 @ "f"
        wfc_in = embed(params["wfc_t"], 1 * H)                 # h1 lives @ "f"
        state_w = FH
    else:
        whh0_in = params["whh0_t"]                                     # (H, 4H)
        w1_in = jnp.concatenate([params["wih1_t"], params["whh1_t"]], axis=0)
        wfc_in = params["wfc_t"]                                       # (H, C)
        state_w = H

    whh0_in = whh0_in.astype(jnp.float32)
    w1_in = w1_in.astype(jnp.float32)
    wfc_in = wfc_in.astype(jnp.float32)
    b1_in = jnp.asarray(params["b1"], jnp.float32).reshape(1, FH)
    bfc_in = jnp.asarray(params["bfc"], jnp.float32).reshape(1, C)

    # --- VMEM-aware time-chunk selection -------------------------------------
    itm = 4  # f32 bytes
    weight_bytes = (whh0_in.size + w1_in.size + wfc_in.size + FH + C) * itm
    state_bytes = 4 * Bp * state_w * itm + 2 * Bp * C * itm
    fixed_bytes = 2 * weight_bytes + state_bytes   # conservative (2x weights)
    try:
        vmem_bytes = int(pltpu.get_tpu_info().vmem_capacity_bytes)
    except Exception:
        vmem_bytes = 64 * 1024 * 1024              # v7x per-core VMEM (smallest)
    per_step = 2 * Bp * FH * itm                   # double-buffered x_proj slice
    if t_chunk is None:
        budget = vmem_bytes // 2 - fixed_bytes
        t_chunk = max(1, min(128, T, budget // per_step))
    t_chunk = int(max(1, min(t_chunk, T)))

    Tp = ((T + t_chunk - 1) // t_chunk) * t_chunk  # no degenerate chunks for prime T
    if Tp != T:
        x_proj = jnp.pad(x_proj, ((0, Tp - T), (0, 0), (0, 0)))
    n_chunks = Tp // t_chunk
    needs_mask = Tp != T
    unroll = int(min(t_chunk, 8))                  # keep adjacent steps interleavable

    kernel = _make_kernel(Bp=Bp, H=H, C=C, t_chunk=t_chunk, n_chunks=n_chunks,
                          T=T, needs_mask=needs_mask, use_roll=use_roll,
                          unroll=unroll)

    vmem_need = fixed_bytes + 2 * t_chunk * Bp * FH * itm
    vmem_limit = int(min(vmem_bytes, max(vmem_need + (8 << 20), 32 << 20)))

    k1 = FH if use_roll else 2 * H
    cost = pl.CostEstimate(
        flops=2 * T * Bp * FH * (state_w + k1) + 2 * Bp * state_w * C,
        transcendentals=2 * T * Bp * (FH + state_w),
        bytes_accessed=itm * (Tp * Bp * FH + whh0_in.size + w1_in.size
                              + wfc_in.size + FH + C + Bp * C),
    )

    out = pl.pallas_call(
        kernel,
        out_shape=jax.ShapeDtypeStruct((Bp, C), jnp.float32),
        grid_spec=pltpu.PrefetchScalarGridSpec(
            num_scalar_prefetch=0,
            grid=(n_chunks,),
            in_specs=[
                pl.BlockSpec((t_chunk, Bp, FH), lambda t: (t, 0, 0)),
                _const_spec(tuple(whh0_in.shape)),
                _const_spec(tuple(w1_in.shape)),
                _const_spec((1, FH)),
                _const_spec(tuple(wfc_in.shape)),
                _const_spec((1, C)),
            ],
            out_specs=pl.BlockSpec((Bp, C), lambda t: (0, 0)),
            scratch_shapes=[pltpu.VMEM((Bp, state_w), jnp.float32)
                            for _ in range(4)],     # h0, c0, h1, c1 (all f32)
        ),
        compiler_params=pltpu.CompilerParams(
            dimension_semantics=("arbitrary",),
            vmem_limit_bytes=vmem_limit),
        cost_estimate=cost,
    )(x_proj, whh0_in, w1_in, b1_in, wfc_in, bfc_in)

    return out[:B]


def init_params(key, large_input_dim, hidden_dim, num_chromosomes):
    """Deterministic init matching PyTorch LSTM/Linear parameter shapes.

    PyTorch shapes: weight_ih_l0 (4H, D), weight_hh_l0 (4H, H), biases (4H,),
    weight_ih_l1 (4H, H), weight_hh_l1 (4H, H), fc.weight (C, H), fc.bias (C,).
    Stored transposed, with summed (b_ih + b_hh) biases.
    """
    D, H, C = large_input_dim, hidden_dim, num_chromosomes
    k = 1.0 / jnp.sqrt(jnp.float32(H))
    keys = jax.random.split(key, 10)
    u = lambda kk, shape: jax.random.uniform(kk, shape, jnp.float32, -k, k)

    wih0 = u(keys[0], (4 * H, D))
    whh0 = u(keys[1], (4 * H, H))
    bih0 = u(keys[2], (4 * H,))
    bhh0 = u(keys[3], (4 * H,))
    wih1 = u(keys[4], (4 * H, H))
    whh1 = u(keys[5], (4 * H, H))
    bih1 = u(keys[6], (4 * H,))
    bhh1 = u(keys[7], (4 * H,))
    wfc = u(keys[8], (C, H))
    bfc = u(keys[9], (C,))

    return dict(
        wih0_t=wih0.T, whh0_t=whh0.T, b0=(bih0 + bhh0).reshape(1, 4 * H),
        wih1_t=wih1.T, whh1_t=whh1.T, b1=(bih1 + bhh1).reshape(1, 4 * H),
        wfc_t=wfc.T, bfc=bfc.reshape(1, C),
    )


def reference_forward(large_x, params):
    """Pure-JAX f32 reference of the PyTorch forward (for sanity checking)."""
    B, T, D = large_x.shape
    H = params["whh0_t"].shape[0]

    def cell(x_t, h, c, wih, whh, b):
        g = x_t @ wih + h @ whh + b
        i = jax.nn.sigmoid(g[:, 0 * H:1 * H])
        f = jax.nn.sigmoid(g[:, 1 * H:2 * H])
        gg = jnp.tanh(g[:, 2 * H:3 * H])
        o = jax.nn.sigmoid(g[:, 3 * H:4 * H])
        c = f * c + i * gg
        return o * jnp.tanh(c), c

    h0 = c0 = h1 = c1 = jnp.zeros((B, H), jnp.float32)
    for t in range(T):
        h0, c0 = cell(large_x[:, t, :], h0, c0,
                      params["wih0_t"], params["whh0_t"], params["b0"])
        h1, c1 = cell(h0, h1, c1,
                      params["wih1_t"], params["whh1_t"], params["b1"])
    return h1 @ params["wfc_t"] + params["bfc"]


if __name__ == "__main__":
    key = jax.random.PRNGKey(0)

    # Case 1: small shapes matching the module (roll / lane-block path, H < 128).
    B, T, D, H, C = 2, 8, 32, 32, 4
    k_x, k_p, key = jax.random.split(key, 3)
    x = jax.random.normal(k_x, (B, T, D), jnp.float32)
    params = init_params(k_p, D, H, C)
    ref = reference_forward(x, params)
    out = jax.block_until_ready(chromosome_selector(x, params))
    assert out.shape == (B, C)
    assert jnp.allclose(out, ref, rtol=1e-4, atol=1e-4), "roll-path mismatch"

    # Case 2: awkward T with explicit small chunk (multi-chunk grid + tail mask).
    x7 = x[:, :7, :]
    ref7 = reference_forward(x7, params)
    out7 = jax.block_until_ready(chromosome_selector(x7, params, t_chunk=4))
    assert jnp.allclose(out7, ref7, rtol=1e-4, atol=1e-4), "tail-mask mismatch"

    # Case 3: compact-state path (H a multiple of 128, no zero-embedded weights).
    B3, T3, D3, H3, C3 = 2, 5, 16, 128, 4
    k_x3, k_p3, key = jax.random.split(key, 3)
    x3 = jax.random.normal(k_x3, (B3, T3, D3), jnp.float32)
    params3 = init_params(k_p3, D3, H3, C3)
    ref3 = reference_forward(x3, params3)
    out3 = jax.block_until_ready(chromosome_selector(x3, params3))
    assert jnp.allclose(out3, ref3, rtol=1e-4, atol=1e-4), "compact-path mismatch"

    print("KERNEL_OK")
</pallas_src>

<mosaic_0001>
module attributes {stable_mosaic.version = 11 : i64} {
  func.func @kernel(%arg0: i32, %arg1: memref<8x8x128xf32, #tpu.memory_space<vmem>>, %arg2: memref<128x128xf32, #tpu.memory_space<vmem>>, %arg3: memref<128x128xf32, #tpu.memory_space<vmem>>, %arg4: memref<1x128xf32, #tpu.memory_space<vmem>>, %arg5: memref<128x4xf32, #tpu.memory_space<vmem>>, %arg6: memref<1x4xf32, #tpu.memory_space<vmem>>, %arg7: memref<8x4xf32, #tpu.memory_space<vmem>>, %arg8: memref<8x128xf32, #tpu.memory_space<vmem>>, %arg9: memref<8x128xf32, #tpu.memory_space<vmem>>, %arg10: memref<8x128xf32, #tpu.memory_space<vmem>>, %arg11: memref<8x128xf32, #tpu.memory_space<vmem>>) attributes {dimension_semantics = [#tpu.dimension_semantics<arbitrary>], iteration_bounds = array<i64: 1>, scalar_prefetch = 0 : i64, scratch_operands = 4 : i64, tpu.core_type = #tpu.core_type<tc>, window_params = [{transform_indices = @transform_0, window_bounds = array<i64: 8, 8, 128>}, {pipeline_mode = #tpu.pipeline_mode<synchronous>, transform_indices = @transform_1, window_bounds = array<i64: 128, 128>}, {pipeline_mode = #tpu.pipeline_mode<synchronous>, transform_indices = @transform_2, window_bounds = array<i64: 128, 128>}, {pipeline_mode = #tpu.pipeline_mode<synchronous>, transform_indices = @transform_3, window_bounds = array<i64: 1, 128>}, {pipeline_mode = #tpu.pipeline_mode<synchronous>, transform_indices = @transform_4, window_bounds = array<i64: 128, 4>}, {pipeline_mode = #tpu.pipeline_mode<synchronous>, transform_indices = @transform_5, window_bounds = array<i64: 1, 4>}, {pipeline_mode = #tpu.pipeline_mode<synchronous>, transform_indices = @transform_6, window_bounds = array<i64: 8, 4>}]} {
    %c0_i32 = arith.constant 0 : i32
    %0 = arith.cmpi eq, %arg0, %c0_i32 : i32
    %1 = arith.extui %0 : i1 to i32
    %c0_i32_0 = arith.constant 0 : i32
    %2 = arith.cmpi ne, %1, %c0_i32_0 : i32
    scf.if %2 {
      %cst_108 = arith.constant 0.000000e+00 : f32
      %289 = vector.broadcast %cst_108 : f32 to vector<8x128xf32>
      %c0_109 = arith.constant 0 : index
      %c0_110 = arith.constant 0 : index
      %290 = vector.load %arg8[%c0_109, %c0_110] : memref<8x128xf32, #tpu.memory_space<vmem>>, vector<8x128xf32>
      tpu.vector_store %arg8[%c0_109, %c0_110], %289 {strides = array<i32>} : memref<8x128xf32, #tpu.memory_space<vmem>>, vector<8x128xf32>,
      %cst_111 = arith.constant 0.000000e+00 : f32
      %291 = vector.broadcast %cst_111 : f32 to vector<8x128xf32>
      %c0_112 = arith.constant 0 : index
      %c0_113 = arith.constant 0 : index
      %292 = vector.load %arg9[%c0_112, %c0_113] : memref<8x128xf32, #tpu.memory_space<vmem>>, vector<8x128xf32>
      tpu.vector_store %arg9[%c0_112, %c0_113], %291 {strides = array<i32>} : memref<8x128xf32, #tpu.memory_space<vmem>>, vector<8x128xf32>,
      %cst_114 = arith.constant 0.000000e+00 : f32
      %293 = vector.broadcast %cst_114 : f32 to vector<8x128xf32>
      %c0_115 = arith.constant 0 : index
      %c0_116 = arith.constant 0 : index
      %294 = vector.load %arg10[%c0_115, %c0_116] : memref<8x128xf32, #tpu.memory_space<vmem>>, vector<8x128xf32>
      tpu.vector_store %arg10[%c0_115, %c0_116], %293 {strides = array<i32>} : memref<8x128xf32, #tpu.memory_space<vmem>>, vector<8x128xf32>,
      %cst_117 = arith.constant 0.000000e+00 : f32
      %295 = vector.broadcast %cst_117 : f32 to vector<8x128xf32>
      %c0_118 = arith.constant 0 : index
      %c0_119 = arith.constant 0 : index
      %296 = vector.load %arg11[%c0_118, %c0_119] : memref<8x128xf32, #tpu.memory_space<vmem>>, vector<8x128xf32>
      tpu.vector_store %arg11[%c0_118, %c0_119], %295 {strides = array<i32>} : memref<8x128xf32, #tpu.memory_space<vmem>>, vector<8x128xf32>,
    } else {
    }
    %c0 = arith.constant 0 : index
    %c0_1 = arith.constant 0 : index
    %3 = vector.load %arg2[%c0, %c0_1] : memref<128x128xf32, #tpu.memory_space<vmem>>, vector<128x128xf32>
    %c0_2 = arith.constant 0 : index
    %c0_3 = arith.constant 0 : index
    %4 = vector.load %arg3[%c0_2, %c0_3] : memref<128x128xf32, #tpu.memory_space<vmem>>, vector<128x128xf32>
    %c0_4 = arith.constant 0 : index
    %c0_5 = arith.constant 0 : index
    %5 = vector.load %arg4[%c0_4, %c0_5] : memref<1x128xf32, #tpu.memory_space<vmem>>, vector<1x128xf32>
    %6 = vector.shape_cast %5 : vector<1x128xf32> to vector<1x128xf32>
    %7 = vector.broadcast %6 : vector<1x128xf32> to vector<8x128xf32>
    %8 = tpu.iota {dimensions = array<i32: 1>} : vector<8x128xi32>
    %c64_i32 = arith.constant 64 : i32
    %9 = vector.broadcast %c64_i32 : i32 to vector<8x128xi32>
    %10 = arith.cmpi sge, %8, %9 : vector<8x128xi32>
    %c96_i32 = arith.constant 96 : i32
    %11 = vector.broadcast %c96_i32 : i32 to vector<8x128xi32>
    %12 = arith.cmpi slt, %8, %11 : vector<8x128xi32>
    %13 = arith.andi %10, %12 : vector<8x128xi1>
    %cst = arith.constant 1.000000e+00 : f32
    %cst_6 = arith.constant 5.000000e-01 : f32
    %14 = vector.broadcast %cst : f32 to vector<8x128xf32>
    %15 = vector.broadcast %cst_6 : f32 to vector<8x128xf32>
    %16 = arith.select %13, %14, %15 : vector<8x128xi1>, vector<8x128xf32>
    %cst_7 = arith.constant 0.000000e+00 : f32
    %cst_8 = arith.constant 5.000000e-01 : f32
    %17 = vector.broadcast %cst_7 : f32 to vector<8x128xf32>
    %18 = vector.broadcast %cst_8 : f32 to vector<8x128xf32>
    %19 = arith.select %13, %17, %18 : vector<8x128xi1>, vector<8x128xf32>
    %c96_i32_9 = arith.constant 96 : i32
    %20 = vector.broadcast %c96_i32_9 : i32 to vector<8x128xi32>
    %21 = arith.cmpi sge, %8, %20 : vector<8x128xi32>
    %c0_10 = arith.constant 0 : index
    %c0_11 = arith.constant 0 : index
    %22 = vector.load %arg8[%c0_10, %c0_11] : memref<8x128xf32, #tpu.memory_space<vmem>>, vector<8x128xf32>
    %c0_12 = arith.constant 0 : index
    %c0_13 = arith.constant 0 : index
    %23 = vector.load %arg9[%c0_12, %c0_13] : memref<8x128xf32, #tpu.memory_space<vmem>>, vector<8x128xf32>
    %c0_14 = arith.constant 0 : index
    %c0_15 = arith.constant 0 : index
    %24 = vector.load %arg10[%c0_14, %c0_15] : memref<8x128xf32, #tpu.memory_space<vmem>>, vector<8x128xf32>
    %c0_16 = arith.constant 0 : index
    %c0_17 = arith.constant 0 : index
    %25 = vector.load %arg11[%c0_16, %c0_17] : memref<8x128xf32, #tpu.memory_space<vmem>>, vector<8x128xf32>
    %c0_i32_18 = arith.constant 0 : i32
    %26 = arith.index_cast %c0_i32_18 : i32 to index
    %c0_19 = arith.constant 0 : index
    %c0_20 = arith.constant 0 : index
    %27 = vector.load %arg1[%26, %c0_19, %c0_20] : memref<8x8x128xf32, #tpu.memory_space<vmem>>, vector<1x8x128xf32>
    %28 = vector.shape_cast %27 : vector<1x8x128xf32> to vector<8x128xf32>
    %cst_21 = arith.constant dense<0.000000e+00> : vector<8x128xf32>
    %29 = tpu.matmul %22, %3, %cst_21 {dimension_numbers = #tpu.dot_dimension_numbers<[1], [0], [0], [1], [0, 0, 1, 1], [], []>} : vector<8x128xf32>, vector<128x128xf32>, vector<8x128xf32> -> vector<8x128xf32>
    %30 = arith.addf %28, %29 : vector<8x128xf32>
    %31 = arith.mulf %30, %16 : vector<8x128xf32>
    %32 = math.tanh %31 : vector<8x128xf32>
    %33 = arith.mulf %16, %32 : vector<8x128xf32>
    %34 = arith.addf %33, %19 : vector<8x128xf32>
    %c32_i32 = arith.constant 32 : i32
    %35 = tpu.dynamic_rotate %34 by %c32_i32 dim 1 : vector<8x128xf32>, i32 -> vector<8x128xf32>
    %c96_i32_22 = arith.constant 96 : i32
    %36 = tpu.dynamic_rotate %34 by %c96_i32_22 dim 1 : vector<8x128xf32>, i32 -> vector<8x128xf32>
    %37 = arith.mulf %35, %36 : vector<8x128xf32>
    %38 = arith.mulf %34, %23 : vector<8x128xf32>
    %39 = arith.addf %37, %38 : vector<8x128xf32>
    %40 = math.tanh %39 : vector<8x128xf32>
    %c64_i32_23 = arith.constant 64 : i32
    %41 = tpu.dynamic_rotate %40 by %c64_i32_23 dim 1 : vector<8x128xf32>, i32 -> vector<8x128xf32>
    %42 = arith.mulf %34, %41 : vector<8x128xf32>
    %43 = arith.select %21, %42, %24 : vector<8x128xi1>, vector<8x128xf32>
    %cst_24 = arith.constant dense<0.000000e+00> : vector<8x128xf32>
    %44 = tpu.matmul %43, %4, %cst_24 {dimension_numbers = #tpu.dot_dimension_numbers<[1], [0], [0], [1], [0, 0, 1, 1], [], []>} : vector<8x128xf32>, vector<128x128xf32>, vector<8x128xf32> -> vector<8x128xf32>
    %45 = arith.addf %44, %7 : vector<8x128xf32>
    %46 = arith.mulf %45, %16 : vector<8x128xf32>
    %47 = math.tanh %46 : vector<8x128xf32>
    %48 = arith.mulf %16, %47 : vector<8x128xf32>
    %49 = arith.addf %48, %19 : vector<8x128xf32>
    %c32_i32_25 = arith.constant 32 : i32
    %50 = tpu.dynamic_rotate %49 by %c32_i32_25 dim 1 : vector<8x128xf32>, i32 -> vector<8x128xf32>
    %c96_i32_26 = arith.constant 96 : i32
    %51 = tpu.dynamic_rotate %49 by %c96_i32_26 dim 1 : vector<8x128xf32>, i32 -> vector<8x128xf32>
    %52 = arith.mulf %50, %51 : vector<8x128xf32>
    %53 = arith.mulf %49, %25 : vector<8x128xf32>
    %54 = arith.addf %52, %53 : vector<8x128xf32>
    %55 = math.tanh %54 : vector<8x128xf32>
    %c64_i32_27 = arith.constant 64 : i32
    %56 = tpu.dynamic_rotate %49 by %c64_i32_27 dim 1 : vector<8x128xf32>, i32 -> vector<8x128xf32>
    %57 = arith.mulf %56, %55 : vector<8x128xf32>
    %c1_i32 = arith.constant 1 : i32
    %58 = arith.index_cast %c1_i32 : i32 to index
    %c0_28 = arith.constant 0 : index
    %c0_29 = arith.constant 0 : index
    %59 = vector.load %arg1[%58, %c0_28, %c0_29] : memref<8x8x128xf32, #tpu.memory_space<vmem>>, vector<1x8x128xf32>
    %60 = vector.shape_cast %59 : vector<1x8x128xf32> to vector<8x128xf32>
    %cst_30 = arith.constant dense<0.000000e+00> : vector<8x128xf32>
    %61 = tpu.matmul %42, %3, %cst_30 {dimension_numbers = #tpu.dot_dimension_numbers<[1], [0], [0], [1], [0, 0, 1, 1], [], []>} : vector<8x128xf32>, vector<128x128xf32>, vector<8x128xf32> -> vector<8x128xf32>
    %62 = arith.addf %60, %61 : vector<8x128xf32>
    %63 = arith.mulf %62, %16 : vector<8x128xf32>
    %64 = math.tanh %63 : vector<8x128xf32>
    %65 = arith.mulf %16, %64 : vector<8x128xf32>
    %66 = arith.addf %65, %19 : vector<8x128xf32>
    %c32_i32_31 = arith.constant 32 : i32
    %67 = tpu.dynamic_rotate %66 by %c32_i32_31 dim 1 : vector<8x128xf32>, i32 -> vector<8x128xf32>
    %c96_i32_32 = arith.constant 96 : i32
    %68 = tpu.dynamic_rotate %66 by %c96_i32_32 dim 1 : vector<8x128xf32>, i32 -> vector<8x128xf32>
    %69 = arith.mulf %67, %68 : vector<8x128xf32>
    %70 = arith.mulf %66, %39 : vector<8x128xf32>
    %71 = arith.addf %69, %70 : vector<8x128xf32>
    %72 = math.tanh %71 : vector<8x128xf32>
    %c64_i32_33 = arith.constant 64 : i32
    %73 = tpu.dynamic_rotate %72 by %c64_i32_33 dim 1 : vector<8x128xf32>, i32 -> vector<8x128xf32>
    %74 = arith.mulf %66, %73 : vector<8x128xf32>
    %75 = arith.select %21, %74, %57 : vector<8x128xi1>, vector<8x128xf32>
    %cst_34 = arith.constant dense<0.000000e+00> : vector<8x128xf32>
    %76 = tpu.matmul %75, %4, %cst_34 {dimension_numbers = #tpu.dot_dimension_numbers<[1], [0], [0], [1], [0, 0, 1, 1], [], []>} : vector<8x128xf32>, vector<128x128xf32>, vector<8x128xf32> -> vector<8x128xf32>
    %77 = arith.addf %76, %7 : vector<8x128xf32>
    %78 = arith.mulf %77, %16 : vector<8x128xf32>
    %79 = math.tanh %78 : vector<8x128xf32>
    %80 = arith.mulf %16, %79 : vector<8x128xf32>
    %81 = arith.addf %80, %19 : vector<8x128xf32>
    %c32_i32_35 = arith.constant 32 : i32
    %82 = tpu.dynamic_rotate %81 by %c32_i32_35 dim 1 : vector<8x128xf32>, i32 -> vector<8x128xf32>
    %c96_i32_36 = arith.constant 96 : i32
    %83 = tpu.dynamic_rotate %81 by %c96_i32_36 dim 1 : vector<8x128xf32>, i32 -> vector<8x128xf32>
    %84 = arith.mulf %82, %83 : vector<8x128xf32>
    %85 = arith.mulf %81, %54 : vector<8x128xf32>
    %86 = arith.addf %84, %85 : vector<8x128xf32>
    %87 = math.tanh %86 : vector<8x128xf32>
    %c64_i32_37 = arith.constant 64 : i32
    %88 = tpu.dynamic_rotate %81 by %c64_i32_37 dim 1 : vector<8x128xf32>, i32 -> vector<8x128xf32>
    %89 = arith.mulf %88, %87 : vector<8x128xf32>
    %c2_i32 = arith.constant 2 : i32
    %90 = arith.index_cast %c2_i32 : i32 to index
    %c0_38 = arith.constant 0 : index
    %c0_39 = arith.constant 0 : index
    %91 = vector.load %arg1[%90, %c0_38, %c0_39] : memref<8x8x128xf32, #tpu.memory_space<vmem>>, vector<1x8x128xf32>
    %92 = vector.shape_cast %91 : vector<1x8x128xf32> to vector<8x128xf32>
    %cst_40 = arith.constant dense<0.000000e+00> : vector<8x128xf32>
    %93 = tpu.matmul %74, %3, %cst_40 {dimension_numbers = #tpu.dot_dimension_numbers<[1], [0], [0], [1], [0, 0, 1, 1], [], []>} : vector<8x128xf32>, vector<128x128xf32>, vector<8x128xf32> -> vector<8x128xf32>
    %94 = arith.addf %92, %93 : vector<8x128xf32>
    %95 = arith.mulf %94, %16 : vector<8x128xf32>
    %96 = math.tanh %95 : vector<8x128xf32>
    %97 = arith.mulf %16, %96 : vector<8x128xf32>
    %98 = arith.addf %97, %19 : vector<8x128xf32>
    %c32_i32_41 = arith.constant 32 : i32
    %99 = tpu.dynamic_rotate %98 by %c32_i32_41 dim 1 : vector<8x128xf32>, i32 -> vector<8x128xf32>
    %c96_i32_42 = arith.constant 96 : i32
    %100 = tpu.dynamic_rotate %98 by %c96_i32_42 dim 1 : vector<8x128xf32>, i32 -> vector<8x128xf32>
    %101 = arith.mulf %99, %100 : vector<8x128xf32>
    %102 = arith.mulf %98, %71 : vector<8x128xf32>
    %103 = arith.addf %101, %102 : vector<8x128xf32>
    %104 = math.tanh %103 : vector<8x128xf32>
    %c64_i32_43 = arith.constant 64 : i32
    %105 = tpu.dynamic_rotate %104 by %c64_i32_43 dim 1 : vector<8x128xf32>, i32 -> vector<8x128xf32>
    %106 = arith.mulf %98, %105 : vector<8x128xf32>
    %107 = arith.select %21, %106, %89 : vector<8x128xi1>, vector<8x128xf32>
    %cst_44 = arith.constant dense<0.000000e+00> : vector<8x128xf32>
    %108 = tpu.matmul %107, %4, %cst_44 {dimension_numbers = #tpu.dot_dimension_numbers<[1], [0], [0], [1], [0, 0, 1, 1], [], []>} : vector<8x128xf32>, vector<128x128xf32>, vector<8x128xf32> -> vector<8x128xf32>
    %109 = arith.addf %108, %7 : vector<8x128xf32>
    %110 = arith.mulf %109, %16 : vector<8x128xf32>
    %111 = math.tanh %110 : vector<8x128xf32>
    %112 = arith.mulf %16, %111 : vector<8x128xf32>
    %113 = arith.addf %112, %19 : vector<8x128xf32>
    %c32_i32_45 = arith.constant 32 : i32
    %114 = tpu.dynamic_rotate %113 by %c32_i32_45 dim 1 : vector<8x128xf32>, i32 -> vector<8x128xf32>
    %c96_i32_46 = arith.constant 96 : i32
    %115 = tpu.dynamic_rotate %113 by %c96_i32_46 dim 1 : vector<8x128xf32>, i32 -> vector<8x128xf32>
    %116 = arith.mulf %114, %115 : vector<8x128xf32>
    %117 = arith.mulf %113, %86 : vector<8x128xf32>
    %118 = arith.addf %116, %117 : vector<8x128xf32>
    %119 = math.tanh %118 : vector<8x128xf32>
    %c64_i32_47 = arith.constant 64 : i32
    %120 = tpu.dynamic_rotate %113 by %c64_i32_47 dim 1 : vector<8x128xf32>, i32 -> vector<8x128xf32>
    %121 = arith.mulf %120, %119 : vector<8x128xf32>
    %c3_i32 = arith.constant 3 : i32
    %122 = arith.index_cast %c3_i32 : i32 to index
    %c0_48 = arith.constant 0 : index
    %c0_49 = arith.constant 0 : index
    %123 = vector.load %arg1[%122, %c0_48, %c0_49] : memref<8x8x128xf32, #tpu.memory_space<vmem>>, vector<1x8x128xf32>
    %124 = vector.shape_cast %123 : vector<1x8x128xf32> to vector<8x128xf32>
    %cst_50 = arith.constant dense<0.000000e+00> : vector<8x128xf32>
    %125 = tpu.matmul %106, %3, %cst_50 {dimension_numbers = #tpu.dot_dimension_numbers<[1], [0], [0], [1], [0, 0, 1, 1], [], []>} : vector<8x128xf32>, vector<128x128xf32>, vector<8x128xf32> -> vector<8x128xf32>
    %126 = arith.addf %124, %125 : vector<8x128xf32>
    %127 = arith.mulf %126, %16 : vector<8x128xf32>
    %128 = math.tanh %127 : vector<8x128xf32>
    %129 = arith.mulf %16, %128 : vector<8x128xf32>
    %130 = arith.addf %129, %19 : vector<8x128xf32>
    %c32_i32_51 = arith.constant 32 : i32
    %131 = tpu.dynamic_rotate %130 by %c32_i32_51 dim 1 : vector<8x128xf32>, i32 -> vector<8x128xf32>
    %c96_i32_52 = arith.constant 96 : i32
    %132 = tpu.dynamic_rotate %130 by %c96_i32_52 dim 1 : vector<8x128xf32>, i32 -> vector<8x128xf32>
    %133 = arith.mulf %131, %132 : vector<8x128xf32>
    %134 = arith.mulf %130, %103 : vector<8x128xf32>
    %135 = arith.addf %133, %134 : vector<8x128xf32>
    %136 = math.tanh %135 : vector<8x128xf32>
    %c64_i32_53 = arith.constant 64 : i32
    %137 = tpu.dynamic_rotate %136 by %c64_i32_53 dim 1 : vector<8x128xf32>, i32 -> vector<8x128xf32>
    %138 = arith.mulf %130, %137 : vector<8x128xf32>
    %139 = arith.select %21, %138, %121 : vector<8x128xi1>, vector<8x128xf32>
    %cst_54 = arith.constant dense<0.000000e+00> : vector<8x128xf32>
    %140 = tpu.matmul %139, %4, %cst_54 {dimension_numbers = #tpu.dot_dimension_numbers<[1], [0], [0], [1], [0, 0, 1, 1], [], []>} : vector<8x128xf32>, vector<128x128xf32>, vector<8x128xf32> -> vector<8x128xf32>
    %141 = arith.addf %140, %7 : vector<8x128xf32>
    %142 = arith.mulf %141, %16 : vector<8x128xf32>
    %143 = math.tanh %142 : vector<8x128xf32>
    %144 = arith.mulf %16, %143 : vector<8x128xf32>
    %145 = arith.addf %144, %19 : vector<8x128xf32>
    %c32_i32_55 = arith.constant 32 : i32
    %146 = tpu.dynamic_rotate %145 by %c32_i32_55 dim 1 : vector<8x128xf32>, i32 -> vector<8x128xf32>
    %c96_i32_56 = arith.constant 96 : i32
    %147 = tpu.dynamic_rotate %145 by %c96_i32_56 dim 1 : vector<8x128xf32>, i32 -> vector<8x128xf32>
    %148 = arith.mulf %146, %147 : vector<8x128xf32>
    %149 = arith.mulf %145, %118 : vector<8x128xf32>
    %150 = arith.addf %148, %149 : vector<8x128xf32>
    %151 = math.tanh %150 : vector<8x128xf32>
    %c64_i32_57 = arith.constant 64 : i32
    %152 = tpu.dynamic_rotate %145 by %c64_i32_57 dim 1 : vector<8x128xf32>, i32 -> vector<8x128xf32>
    %153 = arith.mulf %152, %151 : vector<8x128xf32>
    %c4_i32 = arith.constant 4 : i32
    %154 = arith.index_cast %c4_i32 : i32 to index
    %c0_58 = arith.constant 0 : index
    %c0_59 = arith.constant 0 : index
    %155 = vector.load %arg1[%154, %c0_58, %c0_59] : memref<8x8x128xf32, #tpu.memory_space<vmem>>, vector<1x8x128xf32>
    %156 = vector.shape_cast %155 : vector<1x8x128xf32> to vector<8x128xf32>
    %cst_60 = arith.constant dense<0.000000e+00> : vector<8x128xf32>
    %157 = tpu.matmul %138, %3, %cst_60 {dimension_numbers = #tpu.dot_dimension_numbers<[1], [0], [0], [1], [0, 0, 1, 1], [], []>} : vector<8x128xf32>, vector<128x128xf32>, vector<8x128xf32> -> vector<8x128xf32>
    %158 = arith.addf %156, %157 : vector<8x128xf32>
    %159 = arith.mulf %158, %16 : vector<8x128xf32>
    %160 = math.tanh %159 : vector<8x128xf32>
    %161 = arith.mulf %16, %160 : vector<8x128xf32>
    %162 = arith.addf %161, %19 : vector<8x128xf32>
    %c32_i32_61 = arith.constant 32 : i32
    %163 = tpu.dynamic_rotate %162 by %c32_i32_61 dim 1 : vector<8x128xf32>, i32 -> vector<8x128xf32>
    %c96_i32_62 = arith.constant 96 : i32
    %164 = tpu.dynamic_rotate %162 by %c96_i32_62 dim 1 : vector<8x128xf32>, i32 -> vector<8x128xf32>
    %165 = arith.mulf %163, %164 : vector<8x128xf32>
    %166 = arith.mulf %162, %135 : vector<8x128xf32>
    %167 = arith.addf %165, %166 : vector<8x128xf32>
    %168 = math.tanh %167 : vector<8x128xf32>
    %c64_i32_63 = arith.constant 64 : i32
    %169 = tpu.dynamic_rotate %168 by %c64_i32_63 dim 1 : vector<8x128xf32>, i32 -> vector<8x128xf32>
    %170 = arith.mulf %162, %169 : vector<8x128xf32>
    %171 = arith.select %21, %170, %153 : vector<8x128xi1>, vector<8x128xf32>
    %cst_64 = arith.constant dense<0.000000e+00> : vector<8x128xf32>
    %172 = tpu.matmul %171, %4, %cst_64 {dimension_numbers = #tpu.dot_dimension_numbers<[1], [0], [0], [1], [0, 0, 1, 1], [], []>} : vector<8x128xf32>, vector<128x128xf32>, vector<8x128xf32> -> vector<8x128xf32>
    %173 = arith.addf %172, %7 : vector<8x128xf32>
    %174 = arith.mulf %173, %16 : vector<8x128xf32>
    %175 = math.tanh %174 : vector<8x128xf32>
    %176 = arith.mulf %16, %175 : vector<8x128xf32>
    %177 = arith.addf %176, %19 : vector<8x128xf32>
    %c32_i32_65 = arith.constant 32 : i32
    %178 = tpu.dynamic_rotate %177 by %c32_i32_65 dim 1 : vector<8x128xf32>, i32 -> vector<8x128xf32>
    %c96_i32_66 = arith.constant 96 : i32
    %179 = tpu.dynamic_rotate %177 by %c96_i32_66 dim 1 : vector<8x128xf32>, i32 -> vector<8x128xf32>
    %180 = arith.mulf %178, %179 : vector<8x128xf32>
    %181 = arith.mulf %177, %150 : vector<8x128xf32>
    %182 = arith.addf %180, %181 : vector<8x128xf32>
    %183 = math.tanh %182 : vector<8x128xf32>
    %c64_i32_67 = arith.constant 64 : i32
    %184 = tpu.dynamic_rotate %177 by %c64_i32_67 dim 1 : vector<8x128xf32>, i32 -> vector<8x128xf32>
    %185 = arith.mulf %184, %183 : vector<8x128xf32>
    %c5_i32 = arith.constant 5 : i32
    %186 = arith.index_cast %c5_i32 : i32 to index
    %c0_68 = arith.constant 0 : index
    %c0_69 = arith.constant 0 : index
    %187 = vector.load %arg1[%186, %c0_68, %c0_69] : memref<8x8x128xf32, #tpu.memory_space<vmem>>, vector<1x8x128xf32>
    %188 = vector.shape_cast %187 : vector<1x8x128xf32> to vector<8x128xf32>
    %cst_70 = arith.constant dense<0.000000e+00> : vector<8x128xf32>
    %189 = tpu.matmul %170, %3, %cst_70 {dimension_numbers = #tpu.dot_dimension_numbers<[1], [0], [0], [1], [0, 0, 1, 1], [], []>} : vector<8x128xf32>, vector<128x128xf32>, vector<8x128xf32> -> vector<8x128xf32>
    %190 = arith.addf %188, %189 : vector<8x128xf32>
    %191 = arith.mulf %190, %16 : vector<8x128xf32>
    %192 = math.tanh %191 : vector<8x128xf32>
    %193 = arith.mulf %16, %192 : vector<8x128xf32>
    %194 = arith.addf %193, %19 : vector<8x128xf32>
    %c32_i32_71 = arith.constant 32 : i32
    %195 = tpu.dynamic_rotate %194 by %c32_i32_71 dim 1 : vector<8x128xf32>, i32 -> vector<8x128xf32>
    %c96_i32_72 = arith.constant 96 : i32
    %196 = tpu.dynamic_rotate %194 by %c96_i32_72 dim 1 : vector<8x128xf32>, i32 -> vector<8x128xf32>
    %197 = arith.mulf %195, %196 : vector<8x128xf32>
    %198 = arith.mulf %194, %167 : vector<8x128xf32>
    %199 = arith.addf %197, %198 : vector<8x128xf32>
    %200 = math.tanh %199 : vector<8x128xf32>
    %c64_i32_73 = arith.constant 64 : i32
    %201 = tpu.dynamic_rotate %200 by %c64_i32_73 dim 1 : vector<8x128xf32>, i32 -> vector<8x128xf32>
    %202 = arith.mulf %194, %201 : vector<8x128xf32>
    %203 = arith.select %21, %202, %185 : vector<8x128xi1>, vector<8x128xf32>
    %cst_74 = arith.constant dense<0.000000e+00> : vector<8x128xf32>
    %204 = tpu.matmul %203, %4, %cst_74 {dimension_numbers = #tpu.dot_dimension_numbers<[1], [0], [0], [1], [0, 0, 1, 1], [], []>} : vector<8x128xf32>, vector<128x128xf32>, vector<8x128xf32> -> vector<8x128xf32>
    %205 = arith.addf %204, %7 : vector<8x128xf32>
    %206 = arith.mulf %205, %16 : vector<8x128xf32>
    %207 = math.tanh %206 : vector<8x128xf32>
    %208 = arith.mulf %16, %207 : vector<8x128xf32>
    %209 = arith.addf %208, %19 : vector<8x128xf32>
    %c32_i32_75 = arith.constant 32 : i32
    %210 = tpu.dynamic_rotate %209 by %c32_i32_75 dim 1 : vector<8x128xf32>, i32 -> vector<8x128xf32>
    %c96_i32_76 = arith.constant 96 : i32
    %211 = tpu.dynamic_rotate %209 by %c96_i32_76 dim 1 : vector<8x128xf32>, i32 -> vector<8x128xf32>
    %212 = arith.mulf %210, %211 : vector<8x128xf32>
    %213 = arith.mulf %209, %182 : vector<8x128xf32>
    %214 = arith.addf %212, %213 : vector<8x128xf32>
    %215 = math.tanh %214 : vector<8x128xf32>
    %c64_i32_77 = arith.constant 64 : i32
    %216 = tpu.dynamic_rotate %209 by %c64_i32_77 dim 1 : vector<8x128xf32>, i32 -> vector<8x128xf32>
    %217 = arith.mulf %216, %215 : vector<8x128xf32>
    %c6_i32 = arith.constant 6 : i32
    %218 = arith.index_cast %c6_i32 : i32 to index
    %c0_78 = arith.constant 0 : index
    %c0_79 = arith.constant 0 : index
    %219 = vector.load %arg1[%218, %c0_78, %c0_79] : memref<8x8x128xf32, #tpu.memory_space<vmem>>, vector<1x8x128xf32>
    %220 = vector.shape_cast %219 : vector<1x8x128xf32> to vector<8x128xf32>
    %cst_80 = arith.constant dense<0.000000e+00> : vector<8x128xf32>
    %221 = tpu.matmul %202, %3, %cst_80 {dimension_numbers = #tpu.dot_dimension_numbers<[1], [0], [0], [1], [0, 0, 1, 1], [], []>} : vector<8x128xf32>, vector<128x128xf32>, vector<8x128xf32> -> vector<8x128xf32>
    %222 = arith.addf %220, %221 : vector<8x128xf32>
    %223 = arith.mulf %222, %16 : vector<8x128xf32>
    %224 = math.tanh %223 : vector<8x128xf32>
    %225 = arith.mulf %16, %224 : vector<8x128xf32>
    %226 = arith.addf %225, %19 : vector<8x128xf32>
    %c32_i32_81 = arith.constant 32 : i32
    %227 = tpu.dynamic_rotate %226 by %c32_i32_81 dim 1 : vector<8x128xf32>, i32 -> vector<8x128xf32>
    %c96_i32_82 = arith.constant 96 : i32
    %228 = tpu.dynamic_rotate %226 by %c96_i32_82 dim 1 : vector<8x128xf32>, i32 -> vector<8x128xf32>
    %229 = arith.mulf %227, %228 : vector<8x128xf32>
    %230 = arith.mulf %226, %199 : vector<8x128xf32>
    %231 = arith.addf %229, %230 : vector<8x128xf32>
    %232 = math.tanh %231 : vector<8x128xf32>
    %c64_i32_83 = arith.constant 64 : i32
    %233 = tpu.dynamic_rotate %232 by %c64_i32_83 dim 1 : vector<8x128xf32>, i32 -> vector<8x128xf32>
    %234 = arith.mulf %226, %233 : vector<8x128xf32>
    %235 = arith.select %21, %234, %217 : vector<8x128xi1>, vector<8x128xf32>
    %cst_84 = arith.constant dense<0.000000e+00> : vector<8x128xf32>
    %236 = tpu.matmul %235, %4, %cst_84 {dimension_numbers = #tpu.dot_dimension_numbers<[1], [0], [0], [1], [0, 0, 1, 1], [], []>} : vector<8x128xf32>, vector<128x128xf32>, vector<8x128xf32> -> vector<8x128xf32>
    %237 = arith.addf %236, %7 : vector<8x128xf32>
    %238 = arith.mulf %237, %16 : vector<8x128xf32>
    %239 = math.tanh %238 : vector<8x128xf32>
    %240 = arith.mulf %16, %239 : vector<8x128xf32>
    %241 = arith.addf %240, %19 : vector<8x128xf32>
    %c32_i32_85 = arith.constant 32 : i32
    %242 = tpu.dynamic_rotate %241 by %c32_i32_85 dim 1 : vector<8x128xf32>, i32 -> vector<8x128xf32>
    %c96_i32_86 = arith.constant 96 : i32
    %243 = tpu.dynamic_rotate %241 by %c96_i32_86 dim 1 : vector<8x128xf32>, i32 -> vector<8x128xf32>
    %244 = arith.mulf %242, %243 : vector<8x128xf32>
    %245 = arith.mulf %241, %214 : vector<8x128xf32>
    %246 = arith.addf %244, %245 : vector<8x128xf32>
    %247 = math.tanh %246 : vector<8x128xf32>
    %c64_i32_87 = arith.constant 64 : i32
    %248 = tpu.dynamic_rotate %241 by %c64_i32_87 dim 1 : vector<8x128xf32>, i32 -> vector<8x128xf32>
    %249 = arith.mulf %248, %247 : vector<8x128xf32>
    %c7_i32 = arith.constant 7 : i32
    %250 = arith.index_cast %c7_i32 : i32 to index
    %c0_88 = arith.constant 0 : index
    %c0_89 = arith.constant 0 : index
    %251 = vector.load %arg1[%250, %c0_88, %c0_89] : memref<8x8x128xf32, #tpu.memory_space<vmem>>, vector<1x8x128xf32>
    %252 = vector.shape_cast %251 : vector<1x8x128xf32> to vector<8x128xf32>
    %cst_90 = arith.constant dense<0.000000e+00> : vector<8x128xf32>
    %253 = tpu.matmul %234, %3, %cst_90 {dimension_numbers = #tpu.dot_dimension_numbers<[1], [0], [0], [1], [0, 0, 1, 1], [], []>} : vector<8x128xf32>, vector<128x128xf32>, vector<8x128xf32> -> vector<8x128xf32>
    %254 = arith.addf %252, %253 : vector<8x128xf32>
    %255 = arith.mulf %254, %16 : vector<8x128xf32>
    %256 = math.tanh %255 : vector<8x128xf32>
    %257 = arith.mulf %16, %256 : vector<8x128xf32>
    %258 = arith.addf %257, %19 : vector<8x128xf32>
    %c32_i32_91 = arith.constant 32 : i32
    %259 = tpu.dynamic_rotate %258 by %c32_i32_91 dim 1 : vector<8x128xf32>, i32 -> vector<8x128xf32>
    %c96_i32_92 = arith.constant 96 : i32
    %260 = tpu.dynamic_rotate %258 by %c96_i32_92 dim 1 : vector<8x128xf32>, i32 -> vector<8x128xf32>
    %261 = arith.mulf %259, %260 : vector<8x128xf32>
    %262 = arith.mulf %258, %231 : vector<8x128xf32>
    %263 = arith.addf %261, %262 : vector<8x128xf32>
    %264 = math.tanh %263 : vector<8x128xf32>
    %c64_i32_93 = arith.constant 64 : i32
    %265 = tpu.dynamic_rotate %264 by %c64_i32_93 dim 1 : vector<8x128xf32>, i32 -> vector<8x128xf32>
    %266 = arith.mulf %258, %265 : vector<8x128xf32>
    %267 = arith.select %21, %266, %249 : vector<8x128xi1>, vector<8x128xf32>
    %cst_94 = arith.constant dense<0.000000e+00> : vector<8x128xf32>
    %268 = tpu.matmul %267, %4, %cst_94 {dimension_numbers = #tpu.dot_dimension_numbers<[1], [0], [0], [1], [0, 0, 1, 1], [], []>} : vector<8x128xf32>, vector<128x128xf32>, vector<8x128xf32> -> vector<8x128xf32>
    %269 = arith.addf %268, %7 : vector<8x128xf32>
    %270 = arith.mulf %269, %16 : vector<8x128xf32>
    %271 = math.tanh %270 : vector<8x128xf32>
    %272 = arith.mulf %16, %271 : vector<8x128xf32>
    %273 = arith.addf %272, %19 : vector<8x128xf32>
    %c32_i32_95 = arith.constant 32 : i32
    %274 = tpu.dynamic_rotate %273 by %c32_i32_95 dim 1 : vector<8x128xf32>, i32 -> vector<8x128xf32>
    %c96_i32_96 = arith.constant 96 : i32
    %275 = tpu.dynamic_rotate %273 by %c96_i32_96 dim 1 : vector<8x128xf32>, i32 -> vector<8x128xf32>
    %276 = arith.mulf %274, %275 : vector<8x128xf32>
    %277 = arith.mulf %273, %246 : vector<8x128xf32>
    %278 = arith.addf %276, %277 : vector<8x128xf32>
    %279 = math.tanh %278 : vector<8x128xf32>
    %c64_i32_97 = arith.constant 64 : i32
    %280 = tpu.dynamic_rotate %273 by %c64_i32_97 dim 1 : vector<8x128xf32>, i32 -> vector<8x128xf32>
    %281 = arith.mulf %280, %279 : vector<8x128xf32>
    %c8_i32 = arith.constant 8 : i32
    %c0_98 = arith.constant 0 : index
    %c0_99 = arith.constant 0 : index
    %282 = vector.load %arg8[%c0_98, %c0_99] : memref<8x128xf32, #tpu.memory_space<vmem>>, vector<8x128xf32>
    tpu.vector_store %arg8[%c0_98, %c0_99], %266 {strides = array<i32>} : memref<8x128xf32, #tpu.memory_space<vmem>>, vector<8x128xf32>,
    %c0_100 = arith.constant 0 : index
    %c0_101 = arith.constant 0 : index
    %283 = vector.load %arg9[%c0_100, %c0_101] : memref<8x128xf32, #tpu.memory_space<vmem>>, vector<8x128xf32>
    tpu.vector_store %arg9[%c0_100, %c0_101], %263 {strides = array<i32>} : memref<8x128xf32, #tpu.memory_space<vmem>>, vector<8x128xf32>,
    %c0_102 = arith.constant 0 : index
    %c0_103 = arith.constant 0 : index
    %284 = vector.load %arg10[%c0_102, %c0_103] : memref<8x128xf32, #tpu.memory_space<vmem>>, vector<8x128xf32>
    tpu.vector_store %arg10[%c0_102, %c0_103], %281 {strides = array<i32>} : memref<8x128xf32, #tpu.memory_space<vmem>>, vector<8x128xf32>,
    %c0_104 = arith.constant 0 : index
    %c0_105 = arith.constant 0 : index
    %285 = vector.load %arg11[%c0_104, %c0_105] : memref<8x128xf32, #tpu.memory_space<vmem>>, vector<8x128xf32>
    tpu.vector_store %arg11[%c0_104, %c0_105], %278 {strides = array<i32>} : memref<8x128xf32, #tpu.memory_space<vmem>>, vector<8x128xf32>,
    %c0_i32_106 = arith.constant 0 : i32
    %286 = arith.cmpi eq, %arg0, %c0_i32_106 : i32
    %287 = arith.extui %286 : i1 to i32
    %c0_i32_107 = arith.constant 0 : i32
    %288 = arith.cmpi ne, %287, %c0_i32_107 : i32
    scf.if %288 {
      %c0_108 = arith.constant 0 : index
      %c0_109 = arith.constant 0 : index
      %289 = vector.load %arg5[%c0_108, %c0_109] : memref<128x4xf32, #tpu.memory_space<vmem>>, vector<128x4xf32>
      %cst_110 = arith.constant dense<0.000000e+00> : vector<8x4xf32>
      %290 = tpu.matmul %281, %289, %cst_110 {dimension_numbers = #tpu.dot_dimension_numbers<[1], [0], [0], [1], [0, 0, 1, 1], [], []>} : vector<8x128xf32>, vector<128x4xf32>, vector<8x4xf32> -> vector<8x4xf32>
      %c0_111 = arith.constant 0 : index
      %c0_112 = arith.constant 0 : index
      %291 = vector.load %arg6[%c0_111, %c0_112] : memref<1x4xf32, #tpu.memory_space<vmem>>, vector<1x4xf32>
      %292 = vector.broadcast %291 : vector<1x4xf32> to vector<8x4xf32>
      %293 = arith.addf %290, %292 : vector<8x4xf32>
      %c0_113 = arith.constant 0 : index
      %c0_114 = arith.constant 0 : index
      %294 = vector.load %arg7[%c0_113, %c0_114] : memref<8x4xf32, #tpu.memory_space<vmem>>, vector<8x4xf32>
      tpu.vector_store %arg7[%c0_113, %c0_114], %293 {strides = array<i32>} : memref<8x4xf32, #tpu.memory_space<vmem>>, vector<8x4xf32>,
    } else {
    }
    return
  }
  func.func @transform_0(%arg0: i32) -> (i32, i32, i32) {
    %c0_i32 = arith.constant 0 : i32
    %c0_i32_0 = arith.constant 0 : i32
    %c0_i32_1 = arith.constant 0 : i32
    return %arg0, %c0_i32, %c0_i32_0 : i32, i32, i32
  }
  func.func @transform_1(%arg0: i32) -> (i32, i32) {
    %c0_i32 = arith.constant 0 : i32
    %c0_i32_0 = arith.constant 0 : i32
    %c0_i32_1 = arith.constant 0 : i32
    return %c0_i32, %c0_i32_0 : i32, i32
  }
  func.func @transform_2(%arg0: i32) -> (i32, i32) {
    %c0_i32 = arith.constant 0 : i32
    %c0_i32_0 = arith.constant 0 : i32
    %c0_i32_1 = arith.constant 0 : i32
    return %c0_i32, %c0_i32_0 : i32, i32
  }
  func.func @transform_3(%arg0: i32) -> (i32, i32) {
    %c0_i32 = arith.constant 0 : i32
    %c0_i32_0 = arith.constant 0 : i32
    %c0_i32_1 = arith.constant 0 : i32
    return %c0_i32, %c0_i32_0 : i32, i32
  }
  func.func @transform_4(%arg0: i32) -> (i32, i32) {
    %c0_i32 = arith.constant 0 : i32
    %c0_i32_0 = arith.constant 0 : i32
    %c0_i32_1 = arith.constant 0 : i32
    return %c0_i32, %c0_i32_0 : i32, i32
  }
  func.func @transform_5(%arg0: i32) -> (i32, i32) {
    %c0_i32 = arith.constant 0 : i32
    %c0_i32_0 = arith.constant 0 : i32
    %c0_i32_1 = arith.constant 0 : i32
    return %c0_i32, %c0_i32_0 : i32, i32
  }
  func.func @transform_6(%arg0: i32) -> (i32, i32) {
    %c0_i32 = arith.constant 0 : i32
    %c0_i32_0 = arith.constant 0 : i32
    %c0_i32_1 = arith.constant 0 : i32
    return %c0_i32, %c0_i32_0 : i32, i32
  }
}

</mosaic_0001>

<bundles_post_ra>
// kernel: tpu_custom_call.1
= control target key start
LH: loop header
LB: loop body
LE: loop exit
PB: predicated region body
PF: predicated region fallthrough
CT: control target
= control target key end

     0   :  { %11 = vsyncpa [#allocation7], 0  ;;  %s3700_s0 = inlined_call_operand.hbm [shape: f32[8,8,128], index: 0, kind: input, shape index: {}]   ;;  %s3701_s1 = inlined_call_operand.vmem [shape: f32[128,128], index: 1, kind: input, shape index: {}]   ;;  %s3702_s2 = inlined_call_operand.hbm [shape: f32[128,128], index: 2, kind: input, shape index: {}]   ;;  %s3703_s3 = inlined_call_operand.vmem [shape: f32[1,128], index: 3, kind: input, shape index: {}]   ;;  %s3704_s4 = inlined_call_operand.vmem [shape: f32[128,4], index: 4, kind: input, shape index: {}]   ;;  %s3705_s5 = inlined_call_operand.vmem [shape: f32[1,4], index: 5, kind: input, shape index: {}]   ;;  %s3706_s6 = inlined_call_operand.vmem [shape: f32[8,4], index: 6, kind: output, shape index: {}]  }
   0x1   :  { %12 = vsyncpa [#allocation9], 0  ;;  %s3027_s21 = smov [#allocation6]   ;;  %s2979_s25 = scalar_lea.hbm %s3700_s0, 1024 }
   0x2   :  { %s18_s22 = sshll.u32 %s3027_s21, 4  ;;  %p2980_p0 = scmp.ne.s32.totalorder %s3700_s0, %s2979_s25  ;;  %s19_s22 = int_to_ptr.vmem [resolvable:$true] %s18_s22 }
   0x3   :  { %p2983_p1 = scmp.lt.u32.totalorder %s2979_s25, %s3700_s0 }
   0x5   :  { %p2985_p2 = pnand %p2983_p1, %p2980_p0 }
   0x7   :  { %2988 = shalt.err (!%p2985_p2)
}
   0x8   :  { %s2989_s30 = scalar_lea.vmem %s19_s22, 1024  ;;  %p2994_p4 = scmp.lt.s32.totalorder %s19_s22, %s19_s22 }
   0x9   :  { %p2990_p3 = scmp.ne.s32.totalorder %s19_s22, %s2989_s30  ;;  %p2995_p5 = scmp.lt.s32.totalorder %s2989_s30, %s2989_s30 }
   0xb   :  { %p2996_p6 = por %p2995_p5, %p2994_p4 }
   0xd   :  { %p2997_p7 = pnand %p2996_p6, %p2990_p3 }
   0xf   :  { %3000 = shalt.err (!%p2997_p7)
}
  0x10   :  { %s3028_s7 = smov 128   ;;  %s3029_s8 = smov 8  }
  0x11   :  { %24 = dma.hbm_to_vmem [thread:$0]  %s3700_s0, 1024, %s19_s22, [#allocation7], %s3028_s7, %s3028_s7, %s3029_s8  }
  0x12   :  { %s3030_s11 = smov [#allocation8]   ;;  %s3001_s15 = scalar_lea.hbm %s3702_s2, 2048 }
  0x13   :  { %s32_s12 = sshll.u32 %s3030_s11, 4  ;;  %p3002_p8 = scmp.ne.s32.totalorder %s3702_s2, %s3001_s15  ;;  %s33_s12 = int_to_ptr.vmem [resolvable:$true] %s32_s12 }
  0x14   :  { %p3005_p9 = scmp.lt.u32.totalorder %s3001_s15, %s3702_s2 }
  0x16   :  { %p3007_p10 = pnand %p3005_p9, %p3002_p8 }
  0x18   :  { %3010 = shalt.err (!%p3007_p10)
}
  0x19   :  { %s3011_s20 = scalar_lea.vmem %s33_s12, 2048  ;;  %p3016_p12 = scmp.lt.s32.totalorder %s33_s12, %s33_s12 }
  0x1a   :  { %p3012_p11 = scmp.ne.s32.totalorder %s33_s12, %s3011_s20  ;;  %p3017_p13 = scmp.lt.s32.totalorder %s3011_s20, %s3011_s20 }
  0x1c   :  { %p3018_p0 = por %p3017_p13, %p3016_p12 }
  0x1e   :  { %p3019_p1 = pnand %p3018_p0, %p3012_p11 }
  0x20   :  { %3022 = shalt.err (!%p3019_p1)
}
  0x21   :  { %38 = dma.hbm_to_vmem [thread:$0]  %s3702_s2, 2048, %s33_s12, [#allocation9], %s3028_s7, %s3028_s7, %s3029_s8  }
  0x22   :  { %3023 = dma.done.wait [#allocation7], 1024  }
  0x23   :  { %3024 = vsyncadd [#allocation7], 4294966272 }
  0x24   :  { %3025 = dma.done.wait [#allocation9], 2048  }
  0x25   :  { %3026 = vsyncadd [#allocation9], 4294965248  ;;  %v3031_v0 = vmov 0.0|0.0   ;;  %vm3032_vm0 = vmmov 0   ;;  %v3033_v1 = vmov 0.0   ;;  %v59_v2 = vld [vmem:[%s3701_s1] sm:$0xff]  ;;  %v98_v26 = vlaneseq }
  0x26   :  { %2496 = vmatprep.subr.bf16.mxu0 %v3031_v0  ;;  %1933 = vmatprep.mubr.msk.f32.mxu0 %vm3032_vm0, %v3033_v1  ;;  %v60_v3 = vld [vmem:[%s3701_s1 + $0x8] sm:$0xff]  ;;  %v61_v4 = vld [vmem:[%s3701_s1 + $0x10] sm:$0xff]  ;;  %v62_v6 = vld [vmem:[%s3701_s1 + $0x18] sm:$0xff]  ;;  %v3034_v29 = vmov 0.5   ;;  %s3036_s27 = smov 96   ;;  %s3037_s28 = smov 64  }
  0x27   :  { %2520 = vmatprep.subr.bf16.mxu1 %v3031_v0  ;;  %1968 = vmatprep.mubr.msk.f32.mxu1 %vm3032_vm0, %v3033_v1  ;;  %v3112_v5 = vpack.c.bf16 %v60_v3, %v59_v2  ;;  %v3118_v7 = vpack.c.bf16 %v62_v6, %v61_v4  ;;  %v63_v8 = vld [vmem:[%s3701_s1 + $0x20] sm:$0xff]  ;;  %v64_v9 = vld [vmem:[%s3701_s1 + $0x28] sm:$0xff]  ;;  %v65_v11 = vld [vmem:[%s3701_s1 + $0x30] sm:$0xff]  ;;  %v3202_v27 = vand.u32 127, %v98_v26  ;;  %vm1601_vm5 = vcmask 31744  }
  0x28   :  { %v3128_v10 = vpack.c.bf16 %v64_v9, %v63_v8  ;;  %v66_v12 = vld [vmem:[%s3701_s1 + $0x38] sm:$0xff]  ;;  %v67_v14 = vld [vmem:[%s3701_s1 + $0x40] sm:$0xff]  ;;  %v68_v15 = vld [vmem:[%s3701_s1 + $0x48] sm:$0xff] }
  0x29   :  { %2498 = vmatpush3.bf16.msra.mxu0 %v3112_v5  ;;  %v3138_v13 = vpack.c.bf16 %v66_v12, %v65_v11  ;;  %v3148_v16 = vpack.c.bf16 %v68_v15, %v67_v14  ;;  %v69_v17 = vld [vmem:[%s3701_s1 + $0x50] sm:$0xff]  ;;  %v70_v18 = vld [vmem:[%s3701_s1 + $0x58] sm:$0xff]  ;;  %v71_v20 = vld [vmem:[%s3701_s1 + $0x60] sm:$0xff]  ;;  %vm100_vm1 = vcmp.ge.s32.totalorder %v3202_v27, 64  ;;  %vm101_vm2 = vcmp.lt.s32.totalorder %v3202_v27, 96 }
  0x2a   :  { %2499 = vmatprep.subr.bf16.mxu0 %v3031_v0  ;;  %v3158_v19 = vpack.c.bf16 %v70_v18, %v69_v17  ;;  %v72_v21 = vld [vmem:[%s3701_s1 + $0x68] sm:$0xff]  ;;  %v73_v23 = vld [vmem:[%s3701_s1 + $0x70] sm:$0xff]  ;;  %v74_v24 = vld [vmem:[%s3701_s1 + $0x78] sm:$0xff]  ;;  %s3035_s1 = smov 32   ;;  %vm105_vm4 = vcmp.ge.s32.totalorder %v3202_v27, 96 }
  0x2b   :  { %v3168_v22 = vpack.c.bf16 %v72_v21, %v71_v20  ;;  %v3178_v25 = vpack.c.bf16 %v74_v24, %v73_v23  ;;  %vm102_vm3 = vmand %vm100_vm1, %vm101_vm2  ;;  %v110_v28 = vld [vmem:[#allocation6] sm:$0xff]  ;;  %v76_v40 = vld [vmem:[#allocation8 + $0x8] sm:$0xff] }
  0x2c   :  { %v3206_v30 = vsel %vm102_vm3, 1.0, %v3034_v29  ;;  %v3209_v36 = vsel %vm102_vm3, 0.0, %v3034_v29  ;;  %v75_v39 = vld [vmem:[#allocation8] sm:$0xff]  ;;  %v77_v41 = vld [vmem:[#allocation8 + $0x10] sm:$0xff]  ;;  %v78_v43 = vld [vmem:[#allocation8 + $0x18] sm:$0xff] }
  0x2d   :  { %2501 = vmatpush3.bf16.msra.mxu0 %v3118_v7  ;;  %v3215_v42 = vpack.c.bf16 %v76_v40, %v75_v39  ;;  %v3218_v44 = vpack.c.bf16 %v78_v43, %v77_v41  ;;  %v79_v45 = vld [vmem:[#allocation8 + $0x20] sm:$0xff]  ;;  %v80_v46 = vld [vmem:[#allocation8 + $0x28] sm:$0xff]  ;;  %v81_v48 = vld [vmem:[#allocation8 + $0x30] sm:$0xff] }
  0x2e   :  { %2502 = vmatprep.subr.bf16.mxu0 %v3031_v0  ;;  %v3222_v47 = vpack.c.bf16 %v80_v46, %v79_v45  ;;  %v82_v49 = vld [vmem:[#allocation8 + $0x38] sm:$0xff]  ;;  %v83_v51 = vld [vmem:[#allocation8 + $0x40] sm:$0xff]  ;;  %v84_v52 = vld [vmem:[#allocation8 + $0x48] sm:$0xff] }
  0x2f   :  { %2522 = vmatpush3.bf16.msra.mxu1 %v3215_v42  ;;  %v3226_v50 = vpack.c.bf16 %v82_v49, %v81_v48  ;;  %v3230_v53 = vpack.c.bf16 %v84_v52, %v83_v51  ;;  %v85_v54 = vld [vmem:[#allocation8 + $0x50] sm:$0xff]  ;;  %v86_v55 = vld [vmem:[#allocation8 + $0x58] sm:$0xff]  ;;  %v87_v57 = vld [vmem:[#allocation8 + $0x60] sm:$0xff] }
  0x30   :  { %2523 = vmatprep.subr.bf16.mxu1 %v3031_v0  ;;  %v3234_v56 = vpack.c.bf16 %v86_v55, %v85_v54  ;;  %v88_v58 = vld [vmem:[#allocation8 + $0x68] sm:$0xff]  ;;  %v89_v60 = vld [vmem:[#allocation8 + $0x70] sm:$0xff]  ;;  %v90_v61 = vld [vmem:[#allocation8 + $0x78] sm:$0xff] }
  0x31   :  { %2504 = vmatpush3.bf16.msra.mxu0 %v3128_v10  ;;  %v3238_v59 = vpack.c.bf16 %v88_v58, %v87_v57  ;;  %v3242_v62 = vpack.c.bf16 %v90_v61, %v89_v60  ;;  %v284_v12 = vld [vmem:[#allocation6 + $0x8] sm:$0xff]  ;;  %v458_v40 = vld [vmem:[#allocation6 + $0x10] sm:$0xff] }
  0x32   :  { %2505 = vmatprep.subr.bf16.mxu0 %v3031_v0 }
  0x33   :  { %2525 = vmatpush3.bf16.msra.mxu1 %v3218_v44 }
  0x34   :  { %2526 = vmatprep.subr.bf16.mxu1 %v3031_v0 }
  0x35   :  { %2507 = vmatpush3.bf16.msra.mxu0 %v3138_v13 }
  0x36   :  { %2508 = vmatprep.subr.bf16.mxu0 %v3031_v0 }
  0x37   :  { %2528 = vmatpush3.bf16.msra.mxu1 %v3222_v47 }
  0x38   :  { %2529 = vmatprep.subr.bf16.mxu1 %v3031_v0 }
  0x39   :  { %2510 = vmatpush3.bf16.msra.mxu0 %v3148_v16 }
  0x3a   :  { %2511 = vmatprep.subr.bf16.mxu0 %v3031_v0 }
  0x3b   :  { %2531 = vmatpush3.bf16.msra.mxu1 %v3226_v50 }
  0x3c   :  { %2532 = vmatprep.subr.bf16.mxu1 %v3031_v0 }
  0x3d   :  { %2513 = vmatpush3.bf16.msra.mxu0 %v3158_v19 }
  0x3e   :  { %2514 = vmatprep.subr.bf16.mxu0 %v3031_v0 }
  0x3f   :  { %2534 = vmatpush3.bf16.msra.mxu1 %v3230_v53 }
  0x40   :  { %2535 = vmatprep.subr.bf16.mxu1 %v3031_v0 }
  0x41   :  { %2516 = vmatpush3.bf16.msra.mxu0 %v3168_v22 }
  0x42   :  { %2517 = vmatprep.subr.bf16.mxu0 %v3031_v0 }
  0x43   :  { %2537 = vmatpush3.bf16.msra.mxu1 %v3234_v56 }
  0x44   :  { %2538 = vmatprep.subr.bf16.mxu1 %v3031_v0 }
  0x45   :  { %2519 = vmatpush3.bf16.msra.mxu0 %v3178_v25 }
  0x46   :  { %2544 = vmatprep.subr.bf16.mxu0 %v3031_v0 }
  0x47   :  { %2540 = vmatpush3.bf16.msra.mxu1 %v3238_v59 }
  0x48   :  { %1934 = vmatmul.mubr.f32.vlgmr.msra.gmra.mrb[0].mxu0 %v3033_v1  ;;  %2541 = vmatprep.subr.bf16.mxu1 %v3031_v0 }
  0x49   :  { %2546 = vmatpush3.bf16.msra.mxu0 %v3112_v5  ;;  %2003 = vmatprep.mubr.msk.f32.mxu0 %vm3032_vm0, %v3033_v1 }
  0x4a   :  { %2547 = vmatprep.subr.bf16.mxu0 %v3031_v0 }
  0x4b   :  { %2543 = vmatpush3.bf16.msra.mxu1 %v3242_v62 }
  0x4c   :  { %2568 = vmatprep.subr.bf16.mxu1 %v3031_v0 }
  0x4d   :  { %2549 = vmatpush3.bf16.msra.mxu0 %v3118_v7 }
  0x4e   :  { %2550 = vmatprep.subr.bf16.mxu0 %v3031_v0 }
  0x51   :  { %2552 = vmatpush3.bf16.msra.mxu0 %v3128_v10 }
  0x52   :  { %2553 = vmatprep.subr.bf16.mxu0 %v3031_v0 }
  0x55   :  { %2555 = vmatpush3.bf16.msra.mxu0 %v3138_v13 }
  0x56   :  { %2556 = vmatprep.subr.bf16.mxu0 %v3031_v0 }
  0x59   :  { %2558 = vmatpush3.bf16.msra.mxu0 %v3148_v16 }
  0x5a   :  { %2559 = vmatprep.subr.bf16.mxu0 %v3031_v0 }
  0x5d   :  { %2561 = vmatpush3.bf16.msra.mxu0 %v3158_v19 }
  0x5e   :  { %2562 = vmatprep.subr.bf16.mxu0 %v3031_v0 }
  0x61   :  { %2564 = vmatpush3.bf16.msra.mxu0 %v3168_v22 }
  0x62   :  { %2565 = vmatprep.subr.bf16.mxu0 %v3031_v0 }
  0x65   :  { %2567 = vmatpush3.bf16.msra.mxu0 %v3178_v25 }
  0x66   :  { %2592 = vmatprep.subr.bf16.mxu0 %v3031_v0 }
 0x11b   :  { %v177_v31 = vpop.f32.mrb[0].mxu0 }
 0x11c   :  { %v181_v32 = vadd.f32 %v177_v31, %v110_v28  ;;  %v1935_v33 = vpop.f32.mrb[1].mxu0 }
 0x11e   :  { %v182_v34 = vmul.f32 %v181_v32, %v3206_v30 }
 0x120   :  { %2915 = vtanh.f32 %v182_v34 }
 0x12a   :  { %v2916_v35 = vpop.eup %2915 }
 0x12b   :  { %v184_v37 = vmul.f32 %v2916_v35, %v3206_v30 }
 0x12d   :  { %v185_v38 = vadd.f32 %v184_v37, %v3209_v36 }
 0x12f   :  { %186 = vrot.lane.b32.xlu0 %v185_v38, %s3035_s1  ;;  %v191_v4 = vmul.f32 0.0, %v185_v38 }
 0x133   :  { %188 = vrot.lane.b32.xlu0 %v185_v38, %s3036_s27 }
 0x1a1   :  { %v187_v63 = vpop.permute.xlu0 %186 }
 0x1a5   :  { %v189_v2 = vpop.permute.xlu0 %188 }
 0x1a6   :  { %v190_v3 = vmul.f32 %v189_v2, %v187_v63 }
 0x1a8   :  { %v192_v6 = vadd.f32 %v191_v4, %v190_v3 }
 0x1aa   :  { %2917 = vtanh.f32 %v192_v6 }
 0x1b4   :  { %v2918_v8 = vpop.eup %2917 }
 0x1b5   :  { %194 = vrot.lane.b32.xlu1 %v2918_v8, %s3037_s28 }
 0x227   :  { %v195_v9 = vpop.permute.xlu1 %194 }
 0x228   :  { %v196_v11 = vmul.f32 %v195_v9, %v185_v38  ;;  %v3314_v38 = vld [vmem:[%s3703_s3] ss:$0 sm:$0xff] }
 0x22a   :  { %1969 = vmatmul.mubr.msk.f32.vlgmr.msra.gmra.mrb[0].mxu1 %vm105_vm4, %v196_v11  ;;  %2004 = vmatmul.mubr.f32.vlgmr.msra.gmra.mrb[2].mxu0 %v196_v11 }
 0x22b   :  { %2594 = vmatpush3.bf16.msra.mxu0 %v3112_v5  ;;  %2073 = vmatprep.mubr.msk.f32.mxu0 %vm3032_vm0, %v3033_v1 }
 0x22c   :  { %2595 = vmatprep.subr.bf16.mxu0 %v3031_v0  ;;  %2570 = vmatpush3.bf16.msra.mxu1 %v3215_v42 }
 0x22d   :  { %2571 = vmatprep.subr.bf16.mxu1 %v3031_v0  ;;  %2038 = vmatprep.mubr.msk.f32.mxu1 %vm3032_vm0, %v3033_v1 }
 0x22f   :  { %2597 = vmatpush3.bf16.msra.mxu0 %v3118_v7 }
 0x230   :  { %2598 = vmatprep.subr.bf16.mxu0 %v3031_v0  ;;  %2573 = vmatpush3.bf16.msra.mxu1 %v3218_v44 }
 0x231   :  { %2574 = vmatprep.subr.bf16.mxu1 %v3031_v0 }
 0x233   :  { %2600 = vmatpush3.bf16.msra.mxu0 %v3128_v10 }
 0x234   :  { %2601 = vmatprep.subr.bf16.mxu0 %v3031_v0  ;;  %2576 = vmatpush3.bf16.msra.mxu1 %v3222_v47 }
 0x235   :  { %2577 = vmatprep.subr.bf16.mxu1 %v3031_v0 }
 0x237   :  { %2603 = vmatpush3.bf16.msra.mxu0 %v3138_v13 }
 0x238   :  { %2604 = vmatprep.subr.bf16.mxu0 %v3031_v0  ;;  %2579 = vmatpush3.bf16.msra.mxu1 %v3226_v50 }
 0x239   :  { %2580 = vmatprep.subr.bf16.mxu1 %v3031_v0 }
 0x23b   :  { %2606 = vmatpush3.bf16.msra.mxu0 %v3148_v16 }
 0x23c   :  { %2607 = vmatprep.subr.bf16.mxu0 %v3031_v0  ;;  %2582 = vmatpush3.bf16.msra.mxu1 %v3230_v53 }
 0x23d   :  { %2583 = vmatprep.subr.bf16.mxu1 %v3031_v0 }
 0x23f   :  { %2609 = vmatpush3.bf16.msra.mxu0 %v3158_v19 }
 0x240   :  { %2610 = vmatprep.subr.bf16.mxu0 %v3031_v0  ;;  %2585 = vmatpush3.bf16.msra.mxu1 %v3234_v56 }
 0x241   :  { %2586 = vmatprep.subr.bf16.mxu1 %v3031_v0 }
 0x243   :  { %2612 = vmatpush3.bf16.msra.mxu0 %v3168_v22 }
 0x244   :  { %2613 = vmatprep.subr.bf16.mxu0 %v3031_v0  ;;  %2588 = vmatpush3.bf16.msra.mxu1 %v3238_v59 }
 0x245   :  { %2589 = vmatprep.subr.bf16.mxu1 %v3031_v0 }
 0x247   :  { %2615 = vmatpush3.bf16.msra.mxu0 %v3178_v25 }
 0x248   :  { %2591 = vmatpush3.bf16.msra.mxu1 %v3242_v62  ;;  %2640 = vmatprep.subr.bf16.mxu0 %v3031_v0 }
 0x249   :  { %2616 = vmatprep.subr.bf16.mxu1 %v3031_v0 }
 0x2fd   :  { %v264_v14 = vpop.f32.mrb[0].mxu1  ;;  %v351_v15 = vpop.f32.mrb[2].mxu0 }
 0x2fe   :  { %v355_v17 = vadd.f32 %v351_v15, %v284_v12  ;;  %v1970_v18 = vpop.f32.mrb[1].mxu1  ;;  %v2005_v20 = vpop.f32.mrb[3].mxu0  ;;  %v265_v39 = vadd.f32 %v3314_v38, %v264_v14 }
 0x300   :  { %v356_v21 = vmul.f32 %v355_v17, %v3206_v30  ;;  %v268_v41 = vmul.f32 %v265_v39, %v3206_v30 }
 0x302   :  { %2919 = vtanh.f32 %v356_v21 }
 0x30c   :  { %v2920_v23 = vpop.eup %2919 }
 0x30d   :  { %v358_v24 = vmul.f32 %v2920_v23, %v3206_v30 }
 0x30f   :  { %v359_v26 = vadd.f32 %v358_v24, %v3209_v36 }
 0x311   :  { %362 = vrot.lane.b32.xlu0 %v359_v26, %s3036_s27  ;;  %360 = vrot.lane.b32.xlu1 %v359_v26, %s3035_s1  ;;  %v365_v32 = vmul.f32 %v359_v26, %v192_v6 }
 0x383   :  { %v363_v28 = vpop.permute.xlu0 %362  ;;  %v361_v29 = vpop.permute.xlu1 %360 }
 0x384   :  { %v364_v31 = vmul.f32 %v363_v28, %v361_v29 }
 0x386   :  { %v366_v33 = vadd.f32 %v365_v32, %v364_v31  ;;  %v632_v32 = vld [vmem:[#allocation6 + $0x18] sm:$0xff] }
 0x388   :  { %2921 = vtanh.f32 %v366_v33 }
 0x389   :  { %2923 = vtanh.f32 %v268_v41 }
 0x392   :  { %v2922_v34 = vpop.eup %2921 }
 0x393   :  { %368 = vrot.lane.b32.xlu1 %v2922_v34, %s3037_s28  ;;  %v2924_v49 = vpop.eup %2923 }
 0x394   :  { %v270_v55 = vmul.f32 %v2924_v49, %v3206_v30 }
 0x396   :  { %v271_v57 = vadd.f32 %v270_v55, %v3209_v36 }
 0x398   :  { %v277_v6 = vmul.f32 0.0, %v271_v57 }
 0x405   :  { %v369_v35 = vpop.permute.xlu1 %368 }
 0x406   :  { %v370_v37 = vmul.f32 %v369_v35, %v359_v26 }
 0x408   :  { %2074 = vmatmul.mubr.f32.vlgmr.msra.gmra.mrb[4].mxu0 %v370_v37 }
 0x409   :  { %2642 = vmatpush3.bf16.msra.mxu0 %v3112_v5  ;;  %2143 = vmatprep.mubr.msk.f32.mxu0 %vm3032_vm0, %v3033_v1 }
 0x40a   :  { %2643 = vmatprep.subr.bf16.mxu0 %v3031_v0 }
 0x40d   :  { %2645 = vmatpush3.bf16.msra.mxu0 %v3118_v7 }
 0x40e   :  { %2646 = vmatprep.subr.bf16.mxu0 %v3031_v0 }
 0x411   :  { %2648 = vmatpush3.bf16.msra.mxu0 %v3128_v10 }
 0x412   :  { %2649 = vmatprep.subr.bf16.mxu0 %v3031_v0 }
 0x415   :  { %2651 = vmatpush3.bf16.msra.mxu0 %v3138_v13 }
 0x416   :  { %2652 = vmatprep.subr.bf16.mxu0 %v3031_v0 }
 0x419   :  { %2654 = vmatpush3.bf16.msra.mxu0 %v3148_v16 }
 0x41a   :  { %2655 = vmatprep.subr.bf16.mxu0 %v3031_v0 }
 0x41d   :  { %2657 = vmatpush3.bf16.msra.mxu0 %v3158_v19 }
 0x41e   :  { %2658 = vmatprep.subr.bf16.mxu0 %v3031_v0 }
 0x421   :  { %2660 = vmatpush3.bf16.msra.mxu0 %v3168_v22 }
 0x422   :  { %2661 = vmatprep.subr.bf16.mxu0 %v3031_v0 }
 0x425   :  { %2663 = vmatpush3.bf16.msra.mxu0 %v3178_v25 }
 0x426   :  { %2688 = vmatprep.subr.bf16.mxu0 %v3031_v0 }
 0x4db   :  { %v525_v43 = vpop.f32.mrb[4].mxu0 }
 0x4dc   :  { %v529_v45 = vadd.f32 %v525_v43, %v458_v40  ;;  %v2075_v46 = vpop.f32.mrb[5].mxu0 }
 0x4de   :  { %v530_v48 = vmul.f32 %v529_v45, %v3206_v30 }
 0x4e0   :  { %2925 = vtanh.f32 %v530_v48 }
 0x4ea   :  { %v2926_v51 = vpop.eup %2925 }
 0x4eb   :  { %v532_v52 = vmul.f32 %v2926_v51, %v3206_v30 }
 0x4ed   :  { %v533_v54 = vadd.f32 %v532_v52, %v3209_v36 }
 0x4ef   :  { %536 = vrot.lane.b32.xlu1 %v533_v54, %s3036_s27  ;;  %534 = vrot.lane.b32.xlu0 %v533_v54, %s3035_s1  ;;  %v539_v63 = vmul.f32 %v533_v54, %v366_v33 }
 0x4f3   :  { %274 = vrot.lane.b32.xlu1 %v271_v57, %s3036_s27  ;;  %272 = vrot.lane.b32.xlu0 %v271_v57, %s3035_s1 }
 0x4f7   :  { %280 = vrot.lane.b32.xlu0 %v271_v57, %s3037_s28 }
 0x561   :  { %v537_v58 = vpop.permute.xlu1 %536  ;;  %v535_v60 = vpop.permute.xlu0 %534 }
 0x562   :  { %v538_v61 = vmul.f32 %v537_v58, %v535_v60 }
 0x564   :  { %v3328_v2 = vadd.f32 %v539_v63, %v538_v61 }
 0x565   :  { %v275_v3 = vpop.permute.xlu1 %274  ;;  %v273_v4 = vpop.permute.xlu0 %272 }
 0x566   :  { %2927 = vtanh.f32 %v3328_v2  ;;  %v276_v8 = vmul.f32 %v275_v3, %v273_v4 }
 0x568   :  { %v3331_v9 = vadd.f32 %v277_v6, %v276_v8 }
 0x569   :  { %v281_v14 = vpop.permute.xlu0 %280 }
 0x56a   :  { %2929 = vtanh.f32 %v3331_v9 }
 0x570   :  { %v2928_v11 = vpop.eup %2927 }
 0x571   :  { %542 = vrot.lane.b32.xlu1 %v2928_v11, %s3037_s28 }
 0x574   :  { %v2930_v12 = vpop.eup %2929 }
 0x575   :  { %v282_v15 = vmul.f32 %v2930_v12, %v281_v14 }
 0x577   :  { %v371_v17 = vsel %vm105_vm4, %v370_v37, %v282_v15 }
 0x578   :  { %2039 = vmatmul.mubr.f32.vlgmr.msra.gmra.mrb[2].mxu1 %v371_v17 }
 0x579   :  { %2618 = vmatpush3.bf16.msra.mxu1 %v3215_v42  ;;  %2108 = vmatprep.mubr.msk.f32.mxu1 %vm3032_vm0, %v3033_v1 }
 0x57a   :  { %2619 = vmatprep.subr.bf16.mxu1 %v3031_v0 }
 0x57d   :  { %2621 = vmatpush3.bf16.msra.mxu1 %v3218_v44 }
 0x57e   :  { %2622 = vmatprep.subr.bf16.mxu1 %v3031_v0 }
 0x581   :  { %2624 = vmatpush3.bf16.msra.mxu1 %v3222_v47 }
 0x582   :  { %2625 = vmatprep.subr.bf16.mxu1 %v3031_v0 }
 0x585   :  { %2627 = vmatpush3.bf16.msra.mxu1 %v3226_v50 }
 0x586   :  { %2628 = vmatprep.subr.bf16.mxu1 %v3031_v0 }
 0x589   :  { %2630 = vmatpush3.bf16.msra.mxu1 %v3230_v53 }
 0x58a   :  { %2631 = vmatprep.subr.bf16.mxu1 %v3031_v0 }
 0x58d   :  { %2633 = vmatpush3.bf16.msra.mxu1 %v3234_v56 }
 0x58e   :  { %2634 = vmatprep.subr.bf16.mxu1 %v3031_v0 }
 0x591   :  { %2636 = vmatpush3.bf16.msra.mxu1 %v3238_v59 }
 0x592   :  { %2637 = vmatprep.subr.bf16.mxu1 %v3031_v0 }
 0x595   :  { %2639 = vmatpush3.bf16.msra.mxu1 %v3242_v62 }
 0x596   :  { %2664 = vmatprep.subr.bf16.mxu1 %v3031_v0 }
 0x5e3   :  { %v543_v18 = vpop.permute.xlu1 %542 }
 0x5e4   :  { %v544_v20 = vmul.f32 %v543_v18, %v533_v54 }
 0x5e6   :  { %2144 = vmatmul.mubr.f32.vlgmr.msra.gmra.mrb[6].mxu0 %v544_v20 }
 0x5e7   :  { %2690 = vmatpush3.bf16.msra.mxu0 %v3112_v5  ;;  %2213 = vmatprep.mubr.msk.f32.mxu0 %vm3032_vm0, %v3033_v1 }
 0x5e8   :  { %2691 = vmatprep.subr.bf16.mxu0 %v3031_v0 }
 0x5eb   :  { %2693 = vmatpush3.bf16.msra.mxu0 %v3118_v7 }
 0x5ec   :  { %2694 = vmatprep.subr.bf16.mxu0 %v3031_v0 }
 0x5ef   :  { %2696 = vmatpush3.bf16.msra.mxu0 %v3128_v10 }
 0x5f0   :  { %2697 = vmatprep.subr.bf16.mxu0 %v3031_v0 }
 0x5f3   :  { %2699 = vmatpush3.bf16.msra.mxu0 %v3138_v13 }
 0x5f4   :  { %2700 = vmatprep.subr.bf16.mxu0 %v3031_v0 }
 0x5f7   :  { %2702 = vmatpush3.bf16.msra.mxu0 %v3148_v16 }
 0x5f8   :  { %2703 = vmatprep.subr.bf16.mxu0 %v3031_v0 }
 0x5fb   :  { %2705 = vmatpush3.bf16.msra.mxu0 %v3158_v19 }
 0x5fc   :  { %2706 = vmatprep.subr.bf16.mxu0 %v3031_v0 }
 0x5ff   :  { %2708 = vmatpush3.bf16.msra.mxu0 %v3168_v22 }
 0x600   :  { %2709 = vmatprep.subr.bf16.mxu0 %v3031_v0 }
 0x603   :  { %2711 = vmatpush3.bf16.msra.mxu0 %v3178_v25 }
 0x604   :  { %2736 = vmatprep.subr.bf16.mxu0 %v3031_v0 }
 0x64b   :  { %v438_v21 = vpop.f32.mrb[2].mxu1 }
 0x64c   :  { %v439_v23 = vadd.f32 %v3314_v38, %v438_v21  ;;  %v2040_v24 = vpop.f32.mrb[3].mxu1 }
 0x64e   :  { %v442_v26 = vmul.f32 %v439_v23, %v3206_v30 }
 0x650   :  { %2931 = vtanh.f32 %v442_v26 }
 0x65a   :  { %v2932_v28 = vpop.eup %2931 }
 0x65b   :  { %v444_v29 = vmul.f32 %v2932_v28, %v3206_v30 }
 0x65d   :  { %v445_v31 = vadd.f32 %v444_v29, %v3209_v36 }
 0x65f   :  { %446 = vrot.lane.b32.xlu0 %v445_v31, %s3035_s1  ;;  %448 = vrot.lane.b32.xlu1 %v445_v31, %s3036_s27  ;;  %v451_v46 = vmul.f32 %v445_v31, %v3331_v9 }
 0x663   :  { %454 = vrot.lane.b32.xlu0 %v445_v31, %s3037_s28  ;;  %v806_v31 = vld [vmem:[#allocation6 + $0x20] sm:$0xff] }
 0x6b9   :  { %v699_v33 = vpop.f32.mrb[6].mxu0 }
 0x6ba   :  { %v703_v34 = vadd.f32 %v699_v33, %v632_v32  ;;  %v2145_v35 = vpop.f32.mrb[7].mxu0 }
 0x6bc   :  { %v704_v37 = vmul.f32 %v703_v34, %v3206_v30 }
 0x6be   :  { %2933 = vtanh.f32 %v704_v37 }
 0x6c8   :  { %v2934_v39 = vpop.eup %2933 }
 0x6c9   :  { %v706_v40 = vmul.f32 %v2934_v39, %v3206_v30 }
 0x6cb   :  { %v707_v41 = vadd.f32 %v706_v40, %v3209_v36 }
 0x6cd   :  { %710 = vrot.lane.b32.xlu0 %v707_v41, %s3036_s27  ;;  %708 = vrot.lane.b32.xlu1 %v707_v41, %s3035_s1  ;;  %v713_v61 = vmul.f32 %v707_v41, %v3328_v2 }
 0x6d1   :  { %v447_v43 = vpop.permute.xlu0 %446  ;;  %v449_v45 = vpop.permute.xlu1 %448 }
 0x6d2   :  { %v450_v48 = vmul.f32 %v449_v45, %v447_v43 }
 0x6d4   :  { %v3386_v49 = vadd.f32 %v451_v46, %v450_v48 }
 0x6d5   :  { %v455_v52 = vpop.permute.xlu0 %454 }
 0x6d6   :  { %2935 = vtanh.f32 %v3386_v49 }
 0x6e0   :  { %v2936_v51 = vpop.eup %2935 }
 0x6e1   :  { %v456_v54 = vmul.f32 %v2936_v51, %v455_v52 }
 0x6e3   :  { %v545_v55 = vsel %vm105_vm4, %v544_v20, %v456_v54 }
 0x6e4   :  { %2109 = vmatmul.mubr.f32.vlgmr.msra.gmra.mrb[4].mxu1 %v545_v55 }
 0x6e5   :  { %2666 = vmatpush3.bf16.msra.mxu1 %v3215_v42  ;;  %2178 = vmatprep.mubr.msk.f32.mxu1 %vm3032_vm0, %v3033_v1 }
 0x6e6   :  { %2667 = vmatprep.subr.bf16.mxu1 %v3031_v0 }
 0x6e9   :  { %2669 = vmatpush3.bf16.msra.mxu1 %v3218_v44 }
 0x6ea   :  { %2670 = vmatprep.subr.bf16.mxu1 %v3031_v0 }
 0x6ed   :  { %2672 = vmatpush3.bf16.msra.mxu1 %v3222_v47 }
 0x6ee   :  { %2673 = vmatprep.subr.bf16.mxu1 %v3031_v0 }
 0x6f1   :  { %2675 = vmatpush3.bf16.msra.mxu1 %v3226_v50 }
 0x6f2   :  { %2676 = vmatprep.subr.bf16.mxu1 %v3031_v0 }
 0x6f5   :  { %2678 = vmatpush3.bf16.msra.mxu1 %v3230_v53 }
 0x6f6   :  { %2679 = vmatprep.subr.bf16.mxu1 %v3031_v0 }
 0x6f9   :  { %2681 = vmatpush3.bf16.msra.mxu1 %v3234_v56 }
 0x6fa   :  { %2682 = vmatprep.subr.bf16.mxu1 %v3031_v0 }
 0x6fd   :  { %2684 = vmatpush3.bf16.msra.mxu1 %v3238_v59 }
 0x6fe   :  { %2685 = vmatprep.subr.bf16.mxu1 %v3031_v0 }
 0x701   :  { %2687 = vmatpush3.bf16.msra.mxu1 %v3242_v62 }
 0x702   :  { %2712 = vmatprep.subr.bf16.mxu1 %v3031_v0 }
 0x73f   :  { %v711_v57 = vpop.permute.xlu0 %710  ;;  %v709_v58 = vpop.permute.xlu1 %708 }
 0x740   :  { %v712_v60 = vmul.f32 %v711_v57, %v709_v58 }
 0x742   :  { %v3410_v63 = vadd.f32 %v713_v61, %v712_v60 }
 0x744   :  { %2937 = vtanh.f32 %v3410_v63 }
 0x74e   :  { %v2938_v3 = vpop.eup %2937 }
 0x74f   :  { %716 = vrot.lane.b32.xlu1 %v2938_v3, %s3037_s28 }
 0x7b7   :  { %v612_v4 = vpop.f32.mrb[4].mxu1 }
 0x7b8   :  { %v613_v6 = vadd.f32 %v3314_v38, %v612_v4  ;;  %v2110_v8 = vpop.f32.mrb[5].mxu1 }
 0x7ba   :  { %v616_v9 = vmul.f32 %v613_v6, %v3206_v30 }
 0x7bc   :  { %2939 = vtanh.f32 %v616_v9 }
 0x7c1   :  { %v717_v11 = vpop.permute.xlu1 %716 }
 0x7c2   :  { %v718_v12 = vmul.f32 %v717_v11, %v707_v41 }
 0x7c4   :  { %2214 = vmatmul.mubr.f32.vlgmr.msra.gmra.mrb[8].mxu0 %v718_v12 }
 0x7c5   :  { %2738 = vmatpush3.bf16.msra.mxu0 %v3112_v5  ;;  %2283 = vmatprep.mubr.msk.f32.mxu0 %vm3032_vm0, %v3033_v1 }
 0x7c6   :  { %v2940_v2 = vpop.eup %2939  ;;  %2739 = vmatprep.subr.bf16.mxu0 %v3031_v0 }
 0x7c7   :  { %v618_v14 = vmul.f32 %v2940_v2, %v3206_v30 }
 0x7c9   :  { %v619_v15 = vadd.f32 %v618_v14, %v3209_v36  ;;  %2741 = vmatpush3.bf16.msra.mxu0 %v3118_v7 }
 0x7ca   :  { %2742 = vmatprep.subr.bf16.mxu0 %v3031_v0 }
 0x7cb   :  { %620 = vrot.lane.b32.xlu0 %v619_v15, %s3035_s1  ;;  %622 = vrot.lane.b32.xlu1 %v619_v15, %s3036_s27  ;;  %v625_v20 = vmul.f32 %v619_v15, %v3386_v49 }
 0x7cd   :  { %2744 = vmatpush3.bf16.msra.mxu0 %v3128_v10 }
 0x7ce   :  { %2745 = vmatprep.subr.bf16.mxu0 %v3031_v0 }
 0x7cf   :  { %628 = vrot.lane.b32.xlu0 %v619_v15, %s3037_s28  ;;  %v980_v15 = vld [vmem:[#allocation6 + $0x28] sm:$0xff] }
 0x7d1   :  { %2747 = vmatpush3.bf16.msra.mxu0 %v3138_v13 }
 0x7d2   :  { %2748 = vmatprep.subr.bf16.mxu0 %v3031_v0 }
 0x7d5   :  { %2750 = vmatpush3.bf16.msra.mxu0 %v3148_v16 }
 0x7d6   :  { %2751 = vmatprep.subr.bf16.mxu0 %v3031_v0 }
 0x7d9   :  { %2753 = vmatpush3.bf16.msra.mxu0 %v3158_v19 }
 0x7da   :  { %2754 = vmatprep.subr.bf16.mxu0 %v3031_v0 }
 0x7dd   :  { %2756 = vmatpush3.bf16.msra.mxu0 %v3168_v22 }
 0x7de   :  { %2757 = vmatprep.subr.bf16.mxu0 %v3031_v0 }
 0x7e1   :  { %2759 = vmatpush3.bf16.msra.mxu0 %v3178_v25 }
 0x7e2   :  { %2784 = vmatprep.subr.bf16.mxu0 %v3031_v0 }
 0x83d   :  { %v621_v17 = vpop.permute.xlu0 %620  ;;  %v623_v18 = vpop.permute.xlu1 %622 }
 0x83e   :  { %v624_v21 = vmul.f32 %v623_v18, %v621_v17 }
 0x840   :  { %v3440_v23 = vadd.f32 %v625_v20, %v624_v21 }
 0x841   :  { %v629_v26 = vpop.permute.xlu0 %628 }
 0x842   :  { %2941 = vtanh.f32 %v3440_v23 }
 0x84c   :  { %v2942_v24 = vpop.eup %2941 }
 0x84d   :  { %v630_v28 = vmul.f32 %v2942_v24, %v629_v26 }
 0x84f   :  { %v719_v29 = vsel %vm105_vm4, %v718_v12, %v630_v28 }
 0x850   :  { %2179 = vmatmul.mubr.f32.vlgmr.msra.gmra.mrb[6].mxu1 %v719_v29 }
 0x851   :  { %2714 = vmatpush3.bf16.msra.mxu1 %v3215_v42  ;;  %2248 = vmatprep.mubr.msk.f32.mxu1 %vm3032_vm0, %v3033_v1 }
 0x852   :  { %2715 = vmatprep.subr.bf16.mxu1 %v3031_v0 }
 0x855   :  { %2717 = vmatpush3.bf16.msra.mxu1 %v3218_v44 }
 0x856   :  { %2718 = vmatprep.subr.bf16.mxu1 %v3031_v0 }
 0x859   :  { %2720 = vmatpush3.bf16.msra.mxu1 %v3222_v47 }
 0x85a   :  { %2721 = vmatprep.subr.bf16.mxu1 %v3031_v0 }
 0x85d   :  { %2723 = vmatpush3.bf16.msra.mxu1 %v3226_v50 }
 0x85e   :  { %2724 = vmatprep.subr.bf16.mxu1 %v3031_v0 }
 0x861   :  { %2726 = vmatpush3.bf16.msra.mxu1 %v3230_v53 }
 0x862   :  { %2727 = vmatprep.subr.bf16.mxu1 %v3031_v0 }
 0x865   :  { %2729 = vmatpush3.bf16.msra.mxu1 %v3234_v56 }
 0x866   :  { %2730 = vmatprep.subr.bf16.mxu1 %v3031_v0 }
 0x869   :  { %2732 = vmatpush3.bf16.msra.mxu1 %v3238_v59 }
 0x86a   :  { %2733 = vmatprep.subr.bf16.mxu1 %v3031_v0 }
 0x86d   :  { %2735 = vmatpush3.bf16.msra.mxu1 %v3242_v62 }
 0x86e   :  { %2760 = vmatprep.subr.bf16.mxu1 %v3031_v0 }
 0x897   :  { %v873_v32 = vpop.f32.mrb[8].mxu0 }
 0x898   :  { %v877_v33 = vadd.f32 %v873_v32, %v806_v31  ;;  %v2215_v34 = vpop.f32.mrb[9].mxu0 }
 0x89a   :  { %v878_v35 = vmul.f32 %v877_v33, %v3206_v30 }
 0x89c   :  { %2943 = vtanh.f32 %v878_v35 }
 0x8a6   :  { %v2944_v37 = vpop.eup %2943 }
 0x8a7   :  { %v880_v39 = vmul.f32 %v2944_v37, %v3206_v30 }
 0x8a9   :  { %v881_v40 = vadd.f32 %v880_v39, %v3209_v36 }
 0x8ab   :  { %884 = vrot.lane.b32.xlu0 %v881_v40, %s3036_s27  ;;  %882 = vrot.lane.b32.xlu1 %v881_v40, %s3035_s1  ;;  %v887_v46 = vmul.f32 %v881_v40, %v3410_v63 }
 0x91d   :  { %v885_v41 = vpop.permute.xlu0 %884  ;;  %v883_v43 = vpop.permute.xlu1 %882 }
 0x91e   :  { %v886_v45 = vmul.f32 %v885_v41, %v883_v43 }
 0x920   :  { %v3469_v48 = vadd.f32 %v887_v46, %v886_v45 }
 0x922   :  { %2945 = vtanh.f32 %v3469_v48 }
 0x923   :  { %v786_v49 = vpop.f32.mrb[6].mxu1 }
 0x924   :  { %v787_v51 = vadd.f32 %v3314_v38, %v786_v49  ;;  %v2180_v52 = vpop.f32.mrb[7].mxu1 }
 0x926   :  { %v790_v54 = vmul.f32 %v787_v51, %v3206_v30 }
 0x928   :  { %2947 = vtanh.f32 %v790_v54 }
 0x92c   :  { %v2946_v55 = vpop.eup %2945 }
 0x92d   :  { %890 = vrot.lane.b32.xlu1 %v2946_v55, %s3037_s28 }
 0x932   :  { %v2948_v57 = vpop.eup %2947 }
 0x933   :  { %v792_v58 = vmul.f32 %v2948_v57, %v3206_v30 }
 0x935   :  { %v793_v60 = vadd.f32 %v792_v58, %v3209_v36 }
 0x937   :  { %794 = vrot.lane.b32.xlu0 %v793_v60, %s3035_s1  ;;  %796 = vrot.lane.b32.xlu1 %v793_v60, %s3036_s27  ;;  %v799_v6 = vmul.f32 %v793_v60, %v3440_v23 }
 0x93b   :  { %802 = vrot.lane.b32.xlu0 %v793_v60, %s3037_s28 }
 0x99f   :  { %v891_v61 = vpop.permute.xlu1 %890 }
 0x9a0   :  { %v892_v63 = vmul.f32 %v891_v61, %v881_v40 }
 0x9a2   :  { %2284 = vmatmul.mubr.f32.vlgmr.msra.gmra.mrb[10].mxu0 %v892_v63 }
 0x9a3   :  { %2786 = vmatpush3.bf16.msra.mxu0 %v3112_v5  ;;  %2353 = vmatprep.mubr.msk.f32.mxu0 %vm3032_vm0, %v3033_v1 }
 0x9a4   :  { %2787 = vmatprep.subr.bf16.mxu0 %v3031_v0 }
 0x9a7   :  { %2789 = vmatpush3.bf16.msra.mxu0 %v3118_v7 }
 0x9a8   :  { %2790 = vmatprep.subr.bf16.mxu0 %v3031_v0 }
 0x9a9   :  { %v795_v3 = vpop.permute.xlu0 %794  ;;  %v797_v4 = vpop.permute.xlu1 %796 }
 0x9aa   :  { %v798_v8 = vmul.f32 %v797_v4, %v795_v3 }
 0x9ab   :  { %2792 = vmatpush3.bf16.msra.mxu0 %v3128_v10 }
 0x9ac   :  { %v3488_v9 = vadd.f32 %v799_v6, %v798_v8  ;;  %2793 = vmatprep.subr.bf16.mxu0 %v3031_v0 }
 0x9ad   :  { %v803_v12 = vpop.permute.xlu0 %802 }
 0x9ae   :  { %2949 = vtanh.f32 %v3488_v9 }
 0x9af   :  { %2795 = vmatpush3.bf16.msra.mxu0 %v3138_v13 }
 0x9b0   :  { %2796 = vmatprep.subr.bf16.mxu0 %v3031_v0 }
 0x9b3   :  { %2798 = vmatpush3.bf16.msra.mxu0 %v3148_v16 }
 0x9b4   :  { %2799 = vmatprep.subr.bf16.mxu0 %v3031_v0 }
 0x9b7   :  { %2801 = vmatpush3.bf16.msra.mxu0 %v3158_v19 }
 0x9b8   :  { %v2950_v11 = vpop.eup %2949  ;;  %2802 = vmatprep.subr.bf16.mxu0 %v3031_v0 }
 0x9b9   :  { %v804_v2 = vmul.f32 %v2950_v11, %v803_v12 }
 0x9bb   :  { %v893_v14 = vsel %vm105_vm4, %v892_v63, %v804_v2  ;;  %2804 = vmatpush3.bf16.msra.mxu0 %v3168_v22 }
 0x9bc   :  { %2249 = vmatmul.mubr.f32.vlgmr.msra.gmra.mrb[8].mxu1 %v893_v14  ;;  %2805 = vmatprep.subr.bf16.mxu0 %v3031_v0 }
 0x9bd   :  { %2762 = vmatpush3.bf16.msra.mxu1 %v3215_v42  ;;  %2318 = vmatprep.mubr.msk.f32.mxu1 %vm3032_vm0, %v3033_v1 }
 0x9be   :  { %2763 = vmatprep.subr.bf16.mxu1 %v3031_v0 }
 0x9bf   :  { %2807 = vmatpush3.bf16.msra.mxu0 %v3178_v25 }
 0x9c0   :  { %2832 = vmatprep.subr.bf16.mxu0 %v3031_v0 }
 0x9c1   :  { %2765 = vmatpush3.bf16.msra.mxu1 %v3218_v44 }
 0x9c2   :  { %2766 = vmatprep.subr.bf16.mxu1 %v3031_v0 }
 0x9c5   :  { %2768 = vmatpush3.bf16.msra.mxu1 %v3222_v47 }
 0x9c6   :  { %2769 = vmatprep.subr.bf16.mxu1 %v3031_v0 }
 0x9c9   :  { %2771 = vmatpush3.bf16.msra.mxu1 %v3226_v50 }
 0x9ca   :  { %2772 = vmatprep.subr.bf16.mxu1 %v3031_v0 }
 0x9cd   :  { %2774 = vmatpush3.bf16.msra.mxu1 %v3230_v53 }
 0x9ce   :  { %2775 = vmatprep.subr.bf16.mxu1 %v3031_v0 }
 0x9d1   :  { %2777 = vmatpush3.bf16.msra.mxu1 %v3234_v56 }
 0x9d2   :  { %2778 = vmatprep.subr.bf16.mxu1 %v3031_v0 }
 0x9d5   :  { %2780 = vmatpush3.bf16.msra.mxu1 %v3238_v59 }
 0x9d6   :  { %2781 = vmatprep.subr.bf16.mxu1 %v3031_v0 }
 0x9d9   :  { %2783 = vmatpush3.bf16.msra.mxu1 %v3242_v62 }
 0x9da   :  { %2808 = vmatprep.subr.bf16.mxu1 %v3031_v0 }
 0xa75   :  { %v1047_v17 = vpop.f32.mrb[10].mxu0 }
 0xa76   :  { %v1051_v18 = vadd.f32 %v1047_v17, %v980_v15  ;;  %v2285_v20 = vpop.f32.mrb[11].mxu0 }
 0xa78   :  { %v1052_v21 = vmul.f32 %v1051_v18, %v3206_v30 }
 0xa7a   :  { %2951 = vtanh.f32 %v1052_v21 }
 0xa84   :  { %v2952_v23 = vpop.eup %2951 }
 0xa85   :  { %v1054_v24 = vmul.f32 %v2952_v23, %v3206_v30 }
 0xa87   :  { %v1055_v26 = vadd.f32 %v1054_v24, %v3209_v36 }
 0xa89   :  { %1058 = vrot.lane.b32.xlu0 %v1055_v26, %s3036_s27  ;;  %1056 = vrot.lane.b32.xlu1 %v1055_v26, %s3035_s1  ;;  %v1061_v41 = vmul.f32 %v1055_v26, %v3469_v48 }
 0xa8f   :  { %v960_v28 = vpop.f32.mrb[8].mxu1 }
 0xa90   :  { %v961_v29 = vadd.f32 %v3314_v38, %v960_v28  ;;  %v2250_v31 = vpop.f32.mrb[9].mxu1 }
 0xa92   :  { %v964_v32 = vmul.f32 %v961_v29, %v3206_v30 }
 0xa94   :  { %2953 = vtanh.f32 %v964_v32 }
 0xa9e   :  { %v2954_v33 = vpop.eup %2953 }
 0xa9f   :  { %v966_v34 = vmul.f32 %v2954_v33, %v3206_v30 }
 0xaa1   :  { %v967_v35 = vadd.f32 %v966_v34, %v3209_v36 }
 0xaa3   :  { %968 = vrot.lane.b32.xlu0 %v967_v35, %s3035_s1  ;;  %v973_v48 = vmul.f32 %v967_v35, %v3488_v9 }
 0xaa7   :  { %976 = vrot.lane.b32.xlu0 %v967_v35, %s3037_s28 }
 0xafb   :  { %v1059_v37 = vpop.permute.xlu0 %1058  ;;  %v1057_v39 = vpop.permute.xlu1 %1056 }
 0xafc   :  { %v1060_v40 = vmul.f32 %v1059_v37, %v1057_v39 }
 0xafe   :  { %v3534_v43 = vadd.f32 %v1061_v41, %v1060_v40 }
 0xb00   :  { %2955 = vtanh.f32 %v3534_v43 }
 0xb0a   :  { %v2956_v45 = vpop.eup %2955 }
 0xb0b   :  { %1064 = vrot.lane.b32.xlu1 %v2956_v45, %s3037_s28 }
 0xb0f   :  { %970 = vrot.lane.b32.xlu1 %v967_v35, %s3036_s27 }
 0xb15   :  { %v969_v51 = vpop.permute.xlu0 %968 }
 0xb19   :  { %v977_v57 = vpop.permute.xlu0 %976 }
 0xb7d   :  { %v1065_v46 = vpop.permute.xlu1 %1064 }
 0xb7e   :  { %v1066_v49 = vmul.f32 %v1065_v46, %v1055_v26 }
 0xb80   :  { %2354 = vmatmul.mubr.f32.vlgmr.msra.gmra.mrb[12].mxu0 %v1066_v49 }
 0xb81   :  { %v971_v52 = vpop.permute.xlu1 %970  ;;  %2834 = vmatpush3.bf16.msra.mxu0 %v3112_v5  ;;  %2423 = vmatprep.mubr.msk.f32.mxu0 %vm3032_vm0, %v3033_v1 }
 0xb82   :  { %v972_v54 = vmul.f32 %v971_v52, %v969_v51  ;;  %2835 = vmatprep.subr.bf16.mxu0 %v3031_v0 }
 0xb84   :  { %v3544_v55 = vadd.f32 %v973_v48, %v972_v54 }
 0xb85   :  { %2837 = vmatpush3.bf16.msra.mxu0 %v3118_v7 }
 0xb86   :  { %2957 = vtanh.f32 %v3544_v55  ;;  %2838 = vmatprep.subr.bf16.mxu0 %v3031_v0 }
 0xb89   :  { %2840 = vmatpush3.bf16.msra.mxu0 %v3128_v10  ;;  %v1154_v10 = vld [vmem:[#allocation6 + $0x30] sm:$0xff] }
 0xb8a   :  { %2841 = vmatprep.subr.bf16.mxu0 %v3031_v0 }
 0xb8d   :  { %2843 = vmatpush3.bf16.msra.mxu0 %v3138_v13 }
 0xb8e   :  { %2844 = vmatprep.subr.bf16.mxu0 %v3031_v0 }
 0xb90   :  { %v2958_v5 = vpop.eup %2957 }
 0xb91   :  { %v978_v58 = vmul.f32 %v2958_v5, %v977_v57  ;;  %2846 = vmatpush3.bf16.msra.mxu0 %v3148_v16 }
 0xb92   :  { %2847 = vmatprep.subr.bf16.mxu0 %v3031_v0 }
 0xb93   :  { %v1067_v7 = vsel %vm105_vm4, %v1066_v49, %v978_v58 }
 0xb94   :  { %2319 = vmatmul.mubr.f32.vlgmr.msra.gmra.mrb[10].mxu1 %v1067_v7 }
 0xb95   :  { %2810 = vmatpush3.bf16.msra.mxu1 %v3215_v42  ;;  %2849 = vmatpush3.bf16.msra.mxu0 %v3158_v19 }
 0xb96   :  { %2811 = vmatprep.subr.bf16.mxu1 %v3031_v0  ;;  %2850 = vmatprep.subr.bf16.mxu0 %v3031_v0 }
 0xb97   :  { %2388 = vmatprep.mubr.msk.f32.mxu1 %vm3032_vm0, %v3033_v1 }
 0xb99   :  { %2813 = vmatpush3.bf16.msra.mxu1 %v3218_v44  ;;  %2852 = vmatpush3.bf16.msra.mxu0 %v3168_v22 }
 0xb9a   :  { %2814 = vmatprep.subr.bf16.mxu1 %v3031_v0  ;;  %2853 = vmatprep.subr.bf16.mxu0 %v3031_v0 }
 0xb9d   :  { %2816 = vmatpush3.bf16.msra.mxu1 %v3222_v47  ;;  %2855 = vmatpush3.bf16.msra.mxu0 %v3178_v25 }
 0xb9e   :  { %2817 = vmatprep.subr.bf16.mxu1 %v3031_v0  ;;  %2880 = vmatprep.subr.bf16.mxu0 %v3031_v0 }
 0xba1   :  { %2819 = vmatpush3.bf16.msra.mxu1 %v3226_v50 }
 0xba2   :  { %2820 = vmatprep.subr.bf16.mxu1 %v3031_v0 }
 0xba5   :  { %2822 = vmatpush3.bf16.msra.mxu1 %v3230_v53 }
 0xba6   :  { %2823 = vmatprep.subr.bf16.mxu1 %v3031_v0 }
 0xba9   :  { %2825 = vmatpush3.bf16.msra.mxu1 %v3234_v56 }
 0xbaa   :  { %2826 = vmatprep.subr.bf16.mxu1 %v3031_v0 }
 0xbad   :  { %2828 = vmatpush3.bf16.msra.mxu1 %v3238_v59 }
 0xbae   :  { %2829 = vmatprep.subr.bf16.mxu1 %v3031_v0 }
 0xbb1   :  { %2831 = vmatpush3.bf16.msra.mxu1 %v3242_v62 }
 0xbb2   :  { %2856 = vmatprep.subr.bf16.mxu1 %v3031_v0 }
 0xc53   :  { %v1221_v13 = vpop.f32.mrb[12].mxu0 }
 0xc54   :  { %v1225_v16 = vadd.f32 %v1221_v13, %v1154_v10  ;;  %v2355_v19 = vpop.f32.mrb[13].mxu0 }
 0xc56   :  { %v1226_v22 = vmul.f32 %v1225_v16, %v3206_v30 }
 0xc58   :  { %2959 = vtanh.f32 %v1226_v22 }
 0xc62   :  { %v2960_v25 = vpop.eup %2959 }
 0xc63   :  { %v1228_v60 = vmul.f32 %v2960_v25, %v3206_v30  ;;  %v1508_v25 = vld [vmem:[%s3704_s4] sm:$0xff] }
 0xc65   :  { %v1229_v61 = vadd.f32 %v1228_v60, %v3209_v36  ;;  %v1509_v60 = vld [vmem:[%s3704_s4 + $0x8] sm:$0xff] }
 0xc67   :  { %v1134_v63 = vpop.f32.mrb[10].mxu1  ;;  %1232 = vrot.lane.b32.xlu0 %v1229_v61, %s3036_s27  ;;  %1230 = vrot.lane.b32.xlu1 %v1229_v61, %s3035_s1  ;;  %v1235_v15 = vmul.f32 %v1229_v61, %v3534_v43 }
 0xc68   :  { %v1135_v3 = vadd.f32 %v3314_v38, %v1134_v63  ;;  %v2320_v4 = vpop.f32.mrb[11].mxu1  ;;  %v2881_v63 = vpack.c.bf16 %v1509_v60, %v1508_v25 }
 0xc69   :  { %v1512_v4 = vld [vmem:[%s3704_s4 + $0x20] sm:$0xff] }
 0xc6a   :  { %v1138_v6 = vmul.f32 %v1135_v3, %v3206_v30  ;;  %v1511_v3 = vld [vmem:[%s3704_s4 + $0x18] sm:$0xff] }
 0xc6c   :  { %2961 = vtanh.f32 %v1138_v6  ;;  %v1513_v6 = vld [vmem:[%s3704_s4 + $0x28] sm:$0xff] }
 0xc76   :  { %v2962_v8 = vpop.eup %2961 }
 0xc77   :  { %v1140_v9 = vmul.f32 %v2962_v8, %v3206_v30  ;;  %v2887_v8 = vpack.c.bf16 %v1513_v6, %v1512_v4 }
 0xc79   :  { %v1141_v11 = vadd.f32 %v1140_v9, %v3209_v36  ;;  %v1514_v9 = vld [vmem:[%s3704_s4 + $0x30] sm:$0xff] }
 0xc7b   :  { %1142 = vrot.lane.b32.xlu0 %v1141_v11, %s3035_s1  ;;  %v1147_v26 = vmul.f32 %v1141_v11, %v3544_v55 }
 0xc7f   :  { %1150 = vrot.lane.b32.xlu0 %v1141_v11, %s3037_s28 }
 0xcd9   :  { %v1233_v12 = vpop.permute.xlu0 %1232  ;;  %v1231_v2 = vpop.permute.xlu1 %1230 }
 0xcda   :  { %v1234_v14 = vmul.f32 %v1233_v12, %v1231_v2 }
 0xcdc   :  { %v1236_v17 = vadd.f32 %v1235_v15, %v1234_v14 }
 0xcde   :  { %2963 = vtanh.f32 %v1236_v17 }
 0xce8   :  { %v2964_v18 = vpop.eup %2963 }
 0xce9   :  { %1238 = vrot.lane.b32.xlu1 %v2964_v18, %s3037_s28  ;;  %v1516_v18 = vld [vmem:[%s3704_s4 + $0x40] sm:$0xff] }
 0xced   :  { %1144 = vrot.lane.b32.xlu1 %v1141_v11, %s3036_s27  ;;  %v1143_v23 = vpop.permute.xlu0 %1142  ;;  %v1515_v11 = vld [vmem:[%s3704_s4 + $0x38] sm:$0xff] }
 0xcee   :  { %v2890_v12 = vpack.c.bf16 %v1515_v11, %v1514_v9 }
 0xcf1   :  { %v1151_v32 = vpop.permute.xlu0 %1150 }
 0xd5b   :  { %v1239_v20 = vpop.permute.xlu1 %1238 }
 0xd5c   :  { %v1240_v21 = vmul.f32 %v1239_v20, %v1229_v61  ;;  %v1510_v61 = vld [vmem:[%s3704_s4 + $0x10] sm:$0xff]  ;;  %v1517_v20 = vld [vmem:[%s3704_s4 + $0x48] sm:$0xff] }
 0xd5d   :  { %v2884_v27 = vpack.c.bf16 %v1511_v3, %v1510_v61 }
 0xd5e   :  { %2424 = vmatmul.mubr.f32.vlgmr.msra.gmra.mrb[14].mxu0 %v1240_v21 }
 0xd5f   :  { %v1145_v24 = vpop.permute.xlu1 %1144  ;;  %2493 = vmatprep.mubr.msk.f32.mxu0 %vm3032_vm0, %v3033_v1  ;;  %2882 = vmatpush3.bf16.msra.mxu0 %v2881_v63 }
 0xd60   :  { %v1146_v28 = vmul.f32 %v1145_v24, %v1143_v23  ;;  %2883 = vmatprep.subr.bf16.mxu0 %v3031_v0  ;;  %v1519_v23 = vld [vmem:[%s3704_s4 + $0x58] sm:$0xff] }
 0xd62   :  { %v1148_v29 = vadd.f32 %v1147_v26, %v1146_v28  ;;  %v1520_v26 = vld [vmem:[%s3704_s4 + $0x60] sm:$0xff]  ;;  %v1521_v28 = vld [vmem:[%s3704_s4 + $0x68] sm:$0xff] }
 0xd63   :  { %2885 = vmatpush3.bf16.msra.mxu0 %v2884_v27 }
 0xd64   :  { %2965 = vtanh.f32 %v1148_v29  ;;  %2886 = vmatprep.subr.bf16.mxu0 %v3031_v0 }
 0xd67   :  { %2888 = vmatpush3.bf16.msra.mxu0 %v2887_v8 }
 0xd68   :  { %2889 = vmatprep.subr.bf16.mxu0 %v3031_v0 }
 0xd6b   :  { %2891 = vmatpush3.bf16.msra.mxu0 %v2890_v12 }
 0xd6c   :  { %2892 = vmatprep.subr.bf16.mxu0 %v3031_v0 }
 0xd6e   :  { %v2966_v31 = vpop.eup %2965 }
 0xd6f   :  { %v1152_v33 = vmul.f32 %v2966_v31, %v1151_v32  ;;  %v2899_v31 = vpack.c.bf16 %v1521_v28, %v1520_v26 }
 0xd71   :  { %v1241_v34 = vsel %vm105_vm4, %v1240_v21, %v1152_v33  ;;  %v2893_v21 = vpack.c.bf16 %v1517_v20, %v1516_v18 }
 0xd72   :  { %2389 = vmatmul.mubr.f32.vlgmr.msra.gmra.mrb[12].mxu1 %v1241_v34  ;;  %v1522_v34 = vld [vmem:[%s3704_s4 + $0x70] sm:$0xff] }
 0xd73   :  { %2858 = vmatpush3.bf16.msra.mxu1 %v3215_v42  ;;  %2458 = vmatprep.mubr.msk.f32.mxu1 %vm3032_vm0, %v3033_v1  ;;  %v1328_v1 = vld [vmem:[#allocation6 + $0x38] sm:$0xff] }
 0xd74   :  { %2859 = vmatprep.subr.bf16.mxu1 %v3031_v0  ;;  %2894 = vmatpush3.bf16.msra.mxu0 %v2893_v21 }
 0xd75   :  { %2895 = vmatprep.subr.bf16.mxu0 %v3031_v0 }
 0xd77   :  { %2861 = vmatpush3.bf16.msra.mxu1 %v3218_v44 }
 0xd78   :  { %2862 = vmatprep.subr.bf16.mxu1 %v3031_v0 }
 0xd7b   :  { %2864 = vmatpush3.bf16.msra.mxu1 %v3222_v47 }
 0xd7c   :  { %2865 = vmatprep.subr.bf16.mxu1 %v3031_v0 }
 0xd7f   :  { %2867 = vmatpush3.bf16.msra.mxu1 %v3226_v50 }
 0xd80   :  { %2868 = vmatprep.subr.bf16.mxu1 %v3031_v0 }
 0xd83   :  { %2870 = vmatpush3.bf16.msra.mxu1 %v3230_v53 }
 0xd84   :  { %2871 = vmatprep.subr.bf16.mxu1 %v3031_v0 }
 0xd87   :  { %2873 = vmatpush3.bf16.msra.mxu1 %v3234_v56 }
 0xd88   :  { %2874 = vmatprep.subr.bf16.mxu1 %v3031_v0 }
 0xd8b   :  { %2876 = vmatpush3.bf16.msra.mxu1 %v3238_v59 }
 0xd8c   :  { %2877 = vmatprep.subr.bf16.mxu1 %v3031_v0 }
 0xd8f   :  { %2879 = vmatpush3.bf16.msra.mxu1 %v3242_v62 }
 0xe31   :  { %v1395_v42 = vpop.f32.mrb[14].mxu0 }
 0xe32   :  { %v1399_v44 = vadd.f32 %v1395_v42, %v1328_v1  ;;  %v2425_v47 = vpop.f32.mrb[15].mxu0  ;;  %v1523_v1 = vld [vmem:[%s3704_s4 + $0x78] sm:$0xff] }
 0xe33   :  { %v2902_v42 = vpack.c.bf16 %v1523_v1, %v1522_v34 }
 0xe34   :  { %v1400_v50 = vmul.f32 %v1399_v44, %v3206_v30 }
 0xe36   :  { %2967 = vtanh.f32 %v1400_v50 }
 0xe40   :  { %v2968_v53 = vpop.eup %2967 }
 0xe41   :  { %v1402_v35 = vmul.f32 %v2968_v53, %v3206_v30 }
 0xe43   :  { %v1403_v56 = vadd.f32 %v1402_v35, %v3209_v36 }
 0xe45   :  { %v1308_v37 = vpop.f32.mrb[12].mxu1  ;;  %1406 = vrot.lane.b32.xlu0 %v1403_v56, %s3036_s27  ;;  %1404 = vrot.lane.b32.xlu1 %v1403_v56, %s3035_s1  ;;  %v1409_v51 = vmul.f32 %v1403_v56, %v1236_v17 }
 0xe46   :  { %v1309_v59 = vadd.f32 %v3314_v38, %v1308_v37  ;;  %v2390_v62 = vpop.f32.mrb[13].mxu1 }
 0xe48   :  { %v1312_v39 = vmul.f32 %v1309_v59, %v3206_v30 }
 0xe4a   :  { %2969 = vtanh.f32 %v1312_v39 }
 0xe54   :  { %v2970_v40 = vpop.eup %2969 }
 0xe55   :  { %v1314_v41 = vmul.f32 %v2970_v40, %v3206_v30 }
 0xe57   :  { %v1315_v43 = vadd.f32 %v1314_v41, %v3209_v36 }
 0xe59   :  { %1318 = vrot.lane.b32.xlu0 %v1315_v43, %s3036_s27  ;;  %1316 = vrot.lane.b32.xlu1 %v1315_v43, %s3035_s1  ;;  %v1321_v57 = vmul.f32 %v1315_v43, %v1148_v29 }
 0xe5d   :  { %1324 = vrot.lane.b32.xlu1 %v1315_v43, %s3037_s28 }
 0xeb7   :  { %v1407_v45 = vpop.permute.xlu0 %1406  ;;  %v1405_v46 = vpop.permute.xlu1 %1404 }
 0xeb8   :  { %v1408_v49 = vmul.f32 %v1407_v45, %v1405_v46 }
 0xeba   :  { %v1410_v52 = vadd.f32 %v1409_v51, %v1408_v49 }
 0xebc   :  { %2971 = vtanh.f32 %v1410_v52 }
 0xec6   :  { %v2972_v48 = vpop.eup %2971 }
 0xec7   :  { %1412 = vrot.lane.b32.xlu0 %v2972_v48, %s3037_s28 }
 0xecb   :  { %v1319_v54 = vpop.permute.xlu0 %1318  ;;  %v1317_v55 = vpop.permute.xlu1 %1316 }
 0xecc   :  { %v1320_v5 = vmul.f32 %v1319_v54, %v1317_v55 }
 0xece   :  { %v1322_v58 = vadd.f32 %v1321_v57, %v1320_v5 }
 0xecf   :  { %v1325_v10 = vpop.permute.xlu1 %1324 }
 0xed0   :  { %2973 = vtanh.f32 %v1322_v58 }
 0xeda   :  { %v2974_v7 = vpop.eup %2973 }
 0xedb   :  { %v1326_v16 = vmul.f32 %v2974_v7, %v1325_v10 }
 0xf39   :  { %v1413_v13 = vpop.permute.xlu0 %1412 }
 0xf3a   :  { %v1414_v19 = vmul.f32 %v1413_v13, %v1403_v56  ;;  %v1610_v56 = vld [vmem:[%s3705_s5] ss:$0 sm:$0xff] }
 0xf3c   :  { %v1415_v22 = vsel %vm105_vm4, %v1414_v19, %v1326_v16 }
 0xf3d   :  { %2459 = vmatmul.mubr.f32.vlgmr.msra.gmra.mrb[14].mxu1 %v1415_v22 }
0x1010   :  { %v1482_v2 = vpop.f32.mrb[14].mxu1 }
0x1011   :  { %v1483_v14 = vadd.f32 %v3314_v38, %v1482_v2  ;;  %v2460_v15 = vpop.f32.mrb[15].mxu1  ;;  %v1518_v38 = vld [vmem:[%s3704_s4 + $0x50] sm:$0xff] }
0x1012   :  { %v2896_v24 = vpack.c.bf16 %v1519_v23, %v1518_v38 }
0x1013   :  { %v1486_v17 = vmul.f32 %v1483_v14, %v3206_v30 }
0x1014   :  { %2897 = vmatpush3.bf16.msra.mxu0 %v2896_v24 }
0x1015   :  { %2975 = vtanh.f32 %v1486_v17  ;;  %2898 = vmatprep.subr.bf16.mxu0 %v3031_v0 }
0x1018   :  { %2900 = vmatpush3.bf16.msra.mxu0 %v2899_v31 }
0x1019   :  { %2901 = vmatprep.subr.bf16.mxu0 %v3031_v0 }
0x101c   :  { %2903 = vmatpush3.bf16.msra.mxu0 %v2902_v42 }
0x101f   :  { %v2976_v29 = vpop.eup %2975 }
0x1020   :  { %v1488_v32 = vmul.f32 %v2976_v29, %v3206_v30 }
0x1022   :  { %v1489_v33 = vadd.f32 %v1488_v32, %v3209_v36 }
0x1024   :  { %1492 = vrot.lane.b32.xlu0 %v1489_v33, %s3036_s27  ;;  %1490 = vrot.lane.b32.xlu1 %v1489_v33, %s3035_s1  ;;  %v1495_v0 = vmul.f32 %v1489_v33, %v1322_v58 }
0x1028   :  { %1498 = vrot.lane.b32.xlu1 %v1489_v33, %s3037_s28 }
0x1096   :  { %v1493_v30 = vpop.permute.xlu0 %1492  ;;  %v1491_v36 = vpop.permute.xlu1 %1490 }
0x1097   :  { %v1494_v44 = vmul.f32 %v1493_v30, %v1491_v36 }
0x1099   :  { %v1496_v47 = vadd.f32 %v1495_v0, %v1494_v44 }
0x109a   :  { %v1499_v53 = vpop.permute.xlu1 %1498 }
0x109b   :  { %2977 = vtanh.f32 %v1496_v47 }
0x10a5   :  { %v2978_v50 = vpop.eup %2977 }
0x10a6   :  { %v1500_v35 = vmul.f32 %v2978_v50, %v1499_v53 }
0x10a8   :  { %2494 = vmatmul.mubr.f32.vlgmr.msra.gmra.mrb[16].mxu0 %v1500_v35 }
0x117b   :  { %v1597_v37 = vpop.f32.mrb[16].mxu0 }
0x117c   :  { %v1598_v59 = vadd.f32 %v1610_v56, %v1597_v37  ;;  %v2495_v62 = vpop.f32.mrb[17].mxu0 }
0x117e   :  { %1602 = vst.msk [vmem:[%s3706_s6] sm:$0xff] %vm1601_vm5, %v1598_v59 }
0x117f   :  { %1607 = vsyncpa [#allocation7], 1 }
0x1180   :  { %1608 = vsyncpa [#allocation9], 1 }

</bundles_post_ra>
